<compile_context>
chip_gen: v7x
topology: tpu7x:2x2x1
jax: 0.10.0
libtpu: 0.0.40
codegen_flags: <defaults>
</compile_context>

<pallas_src>
import numpy as np
import jax
import jax.numpy as jnp
from jax import lax
from jax.experimental import pallas as pl
from jax.experimental.pallas import tpu as pltpu

_OC1 = 64   # ConvTranspose2d(128 -> 64)
_OC2 = 32   # ConvTranspose2d(64  -> 32)

# row/col classes of a ConvTranspose2d(k=4, s=2, p=1) over a constant field:
# class 0 = first output row/col, 1 = interior even, 2 = interior odd, 3 = last.
_T1_TAPS = ((1,), (1, 3), (0, 2), (2,))


# ---------------------------------------------------------------------------
# Kernel 1: fused analyzer
#   token means -> (fused 4x Linear + Linear(1024,512)) -> ReLU -> 512->256
#   -> ReLU -> 256->128 -> (constant-field deconv1 class values) -> ReLU
# ---------------------------------------------------------------------------
def _analyzer_kernel(f0, f1, f2, f3, wcat, b1, w2, b2, w3, b3, s1, bt1, out_ref):
    gs = []
    for fr in (f0, f1, f2, f3):
        f = fr[...]
        if f.shape[1] > 1:
            gs.append(jnp.mean(f[:, 1:, :], axis=1))      # drop CLS token, mean
        else:
            gs.append(f[:, 0, :])
    g = jnp.concatenate(gs, axis=-1)                                    # [B, 4E]
    h1 = jnp.maximum(
        jnp.dot(g, wcat[...], preferred_element_type=jnp.float32) + b1[...], 0.0)
    h2 = jnp.maximum(
        jnp.dot(h1, w2[...], preferred_element_type=jnp.float32) + b2[...], 0.0)
    pat = jnp.dot(h2, w3[...], preferred_element_type=jnp.float32) + b3[...]
    # deconv1 on a spatially-constant field: one matmul over all 16 classes.
    v = jnp.dot(pat, s1[...], preferred_element_type=jnp.float32) + bt1[...]
    out_ref[...] = jnp.maximum(v, 0.0)                                  # [B, 16*64]


def run_analyzer(scale_features, prep):
    B = scale_features[0].shape[0]
    args = list(scale_features) + [
        prep["wcat"], prep["b1f"], prep["w2"], prep["b2"],
        prep["w3"], prep["b3"], prep["s1"], prep["bt1t"]]
    return pl.pallas_call(
        _analyzer_kernel,
        out_shape=jax.ShapeDtypeStruct((B, 16 * _OC1), jnp.float32),
    )(*args)


# ---------------------------------------------------------------------------
# Kernel 2: fused decoder (per batch element)
#   sub-pixel ConvTranspose2d(64,32,4,2,1)+ReLU  ->  polyphase Conv2d(32,1,3,1,1)
#   + Sigmoid.  Output is the confidence map in polyphase layout [4, H1, W1]
#   (component c = 2*qy + qx), so every store is lane-dense.
# ---------------------------------------------------------------------------
def _pad1_hw(x, dtype):
    h, w, c = x.shape
    zr = jnp.zeros((1, w, c), dtype)
    x = jnp.concatenate([zr, x, zr], axis=0)
    zc = jnp.zeros((h + 2, 1, c), dtype)
    return jnp.concatenate([zc, x, zc], axis=1)


def _decoder_kernel(x_ref, w2_ref, b2_ref, w3_ref, b3_ref, out_ref):
    f32 = jnp.float32
    x = x_ref[0]                                           # [H1, W1, 64]
    H1, W1, _ = x.shape
    xp = _pad1_hw(x, f32)                                  # [H1+2, W1+2, 64]

    # sub-pixel deconv: 4 parity planes, K folded to 4*IC = 256
    r = [[None, None], [None, None]]
    for py in range(2):
        for px in range(2):
            xcat = jnp.concatenate(
                [xp[py + dy:py + dy + H1, px + dx:px + dx + W1, :]
                 for dy in range(2) for dx in range(2)], axis=-1)   # [H1,W1,256]
            v = jnp.dot(xcat, w2_ref[2 * py + px],
                        preferred_element_type=f32) + b2_ref[...]
            r[py][px] = jnp.maximum(v, 0.0)                         # [H1,W1,32]

    # pad parity planes for the fused 3x3 conv
    rp = [[_pad1_hw(r[py][px], f32) for px in range(2)] for py in range(2)]

    # polyphase 3x3 conv (OC=1) + bias + sigmoid
    for qy in range(2):
        for qx in range(2):
            acc = jnp.zeros((H1, W1, _OC2), f32)
            for du in (-1, 0, 1):
                py = (qy + du) % 2
                a = (qy + du - py) // 2
                for dv in (-1, 0, 1):
                    px = (qx + dv) % 2
                    c = (qx + dv - px) // 2
                    w = w3_ref[du + 1:du + 2, dv + 1:dv + 2, :]       # [1,1,32]
                    acc = acc + rp[py][px][1 + a:1 + a + H1,
                                           1 + c:1 + c + W1, :] * w
            z = jnp.sum(acc, axis=-1) + b3_ref[...]                   # [H1, W1]
            out_ref[0, 2 * qy + qx, :, :] = jax.nn.sigmoid(z)


def run_decoder(x1, prep):
    B, H1, W1, _ = x1.shape
    return pl.pallas_call(
        _decoder_kernel,
        grid=(B,),
        in_specs=[
            pl.BlockSpec((1, H1, W1, _OC1), lambda b: (b, 0, 0, 0)),
            pl.BlockSpec((4, 4 * _OC1, _OC2), lambda b: (0, 0, 0)),
            pl.BlockSpec((1, _OC2), lambda b: (0, 0)),
            pl.BlockSpec((3, 3, _OC2), lambda b: (0, 0, 0)),
            pl.BlockSpec((1, 1), lambda b: (0, 0)),
        ],
        out_specs=pl.BlockSpec((1, 4, H1, W1), lambda b: (b, 0, 0, 0)),
        out_shape=jax.ShapeDtypeStruct((B, 4, H1, W1), jnp.float32),
        compiler_params=pltpu.CompilerParams(
            dimension_semantics=("parallel",),
            vmem_limit_bytes=64 * 1024 * 1024),
    )(x1, prep["w2cat"], prep["bt2"], prep["w3k"], prep["bc3"])


# ---------------------------------------------------------------------------
# Kernel 3: bilinear (align_corners=True) resize, row-tiled over the output
# ---------------------------------------------------------------------------
def _resize_kernel(x_ref, ry_ref, rxT_ref, out_ref):
    B = x_ref.shape[0]
    for b in range(B):
        t1 = jnp.dot(ry_ref[...], x_ref[b], preferred_element_type=jnp.float32)
        out_ref[b] = jnp.dot(t1, rxT_ref[...], preferred_element_type=jnp.float32)


def _interp_matrix(n_in, n_out):
    if n_out == 1 or n_in == 1:
        src = jnp.zeros((n_out,), jnp.float32)
    else:
        src = jnp.arange(n_out, dtype=jnp.float32) * (n_in - 1) / (n_out - 1)
    i0 = jnp.clip(jnp.floor(src).astype(jnp.int32), 0, n_in - 1)
    i1 = jnp.minimum(i0 + 1, n_in - 1)
    frac = src - i0.astype(jnp.float32)
    oh0 = jax.nn.one_hot(i0, n_in, dtype=jnp.float32)
    oh1 = jax.nn.one_hot(i1, n_in, dtype=jnp.float32)
    return (1.0 - frac)[:, None] * oh0 + frac[:, None] * oh1


def _pick_row_tile(n, cap=256):
    if n <= cap:
        return n
    for t in range(cap, 0, -1):
        if n % t == 0 and t % 8 == 0:
            return t
    return n


def bilinear_resize(x, hout, wout):
    B, hin, win = x.shape
    ry = _interp_matrix(hin, hout)            # [Hout, Hin]
    rxT = _interp_matrix(win, wout).T         # [Win, Wout]
    rt = _pick_row_tile(hout)
    return pl.pallas_call(
        _resize_kernel,
        grid=(hout // rt,),
        in_specs=[
            pl.BlockSpec((B, hin, win), lambda i: (0, 0, 0)),
            pl.BlockSpec((rt, hin), lambda i: (i, 0)),
            pl.BlockSpec((win, wout), lambda i: (0, 0)),
        ],
        out_specs=pl.BlockSpec((B, rt, wout), lambda i: (0, i, 0)),
        out_shape=jax.ShapeDtypeStruct((B, hout, wout), jnp.float32),
        compiler_params=pltpu.CompilerParams(
            dimension_semantics=("parallel",),
            vmem_limit_bytes=64 * 1024 * 1024),
    )(x, ry, rxT)


# ---------------------------------------------------------------------------
# Wrapper (layout glue only)
# ---------------------------------------------------------------------------
def _class_vec(n_in):
    n_out = 2 * n_in
    cls = np.where(np.arange(n_out) % 2 == 0, 1, 2)
    cls[0] = 0
    cls[n_out - 1] = 3
    return cls


def global_gradient_analyzer(scale_features, patch_h, patch_w, prep):
    B = scale_features[0].shape[0]
    init_h, init_w = patch_h // 4, patch_w // 4
    H1, W1 = 2 * init_h, 2 * init_w
    OH, OW = 2 * H1, 2 * W1

    V = run_analyzer(scale_features, prep).reshape(B, 16, _OC1)   # class values

    # assemble deconv1 output (piecewise-constant) from the 16 class values
    cls_y, cls_x = _class_vec(init_h), _class_vec(init_w)
    idx = (cls_y[:, None] * 4 + cls_x[None, :]).reshape(-1)
    x1 = V[:, idx, :].reshape(B, H1, W1, _OC1)

    conf_poly = run_decoder(x1, prep)                             # [B,4,H1,W1]
    conf = (conf_poly.reshape(B, 2, 2, H1, W1)
            .transpose(0, 3, 1, 4, 2).reshape(B, OH, OW))          # interleave

    out = bilinear_resize(conf, patch_h * 14, patch_w * 14)
    return out[:, None, :, :]                                      # [B,1,Ho,Wo]


# ---------------------------------------------------------------------------
# Parameters (PyTorch layouts) + host-side fusion/precompute
# ---------------------------------------------------------------------------
def init_params(key, embed_dim):
    keys = jax.random.split(key, 20)

    def w(k, shape, scale=0.02):
        return jax.random.normal(k, shape, jnp.float32) * scale

    p = {}
    p["fusion_w"] = [w(keys[i], (embed_dim, 256)) for i in range(4)]
    p["fusion_b"] = [w(keys[4 + i], (1, 256)) for i in range(4)]
    p["w1"], p["b1"] = w(keys[8], (1024, 512)), w(keys[9], (1, 512))
    p["w2"], p["b2"] = w(keys[10], (512, 256)), w(keys[11], (1, 256))
    p["w3"], p["b3"] = w(keys[12], (256, 128)), w(keys[13], (1, 128))
    p["wt1"], p["bt1"] = w(keys[14], (128, 64, 4, 4)), w(keys[15], (1, 64))
    p["wt2"], p["bt2"] = w(keys[16], (64, 32, 4, 4)), w(keys[17], (1, 32))
    p["wc3"], p["bc3"] = w(keys[18], (1, 32, 3, 3)), w(keys[19], (1, 1))
    return p


def prepare_params(p):
    prep = {}
    # analyzer fusion: cat(c_i) @ W1 == cat(g_i) @ concat_rows(Wf_i @ W1_i) + b'
    blocks, b1f = [], p["b1"]
    for i in range(4):
        w1s = p["w1"][256 * i:256 * (i + 1), :]
        blocks.append(p["fusion_w"][i] @ w1s)
        b1f = b1f + p["fusion_b"][i] @ w1s
    prep["wcat"], prep["b1f"] = jnp.concatenate(blocks, axis=0), b1f
    prep["w2"], prep["b2"] = p["w2"], p["b2"]
    prep["w3"], prep["b3"] = p["w3"], p["b3"]

    # deconv1 over a constant field: 16 class weight-sums, folded to one matmul
    mats = []
    for cy in range(4):
        for cx in range(4):
            s = 0.0
            for ky in _T1_TAPS[cy]:
                for kx in _T1_TAPS[cx]:
                    s = s + p["wt1"][:, :, ky, kx]
            mats.append(s)                                      # [128, 64]
    s1 = jnp.stack(mats, axis=0)                                # [16, 128, 64]
    prep["s1"] = jnp.transpose(s1, (1, 0, 2)).reshape(128, 16 * _OC1)
    prep["bt1t"] = jnp.tile(p["bt1"], (1, 16))                  # [1, 16*64]

    # deconv2 sub-pixel kernels, (dy,dx,IC) folded into K = 4*IC
    subs = []
    for py in range(2):
        for px in range(2):
            rows = [p["wt2"][:, :, 3 - py - 2 * dy, 3 - px - 2 * dx]
                    for dy in range(2) for dx in range(2)]
            subs.append(jnp.concatenate(rows, axis=0))          # [256, 32]
    prep["w2cat"] = jnp.stack(subs, axis=0)                     # [4, 256, 32]
    prep["bt2"] = p["bt2"]

    prep["w3k"] = jnp.transpose(p["wc3"][0], (1, 2, 0))         # [3, 3, 32]
    prep["bc3"] = p["bc3"]
    return prep


# ---------------------------------------------------------------------------
# Pure-JAX reference (original, unfused formulation) for correctness
# ---------------------------------------------------------------------------
def _reference_forward(scale_features, patch_h, patch_w, p):
    B = scale_features[0].shape[0]
    comps = []
    for i, f in enumerate(scale_features):
        g = f[:, 1:, :].mean(axis=1) if f.shape[1] > 1 else f[:, 0, :]
        comps.append(g @ p["fusion_w"][i] + p["fusion_b"][i])
    m = jnp.concatenate(comps, axis=1)
    h = jax.nn.relu(m @ p["w1"] + p["b1"])
    h = jax.nn.relu(h @ p["w2"] + p["b2"])
    pat = h @ p["w3"] + p["b3"]
    ih, iw = patch_h // 4, patch_w // 4
    x = jnp.broadcast_to(pat[:, :, None, None], (B, 128, ih, iw))

    def convT(x, w_t, b, stride, pad):
        k = w_t.shape[-1]
        w = jnp.transpose(w_t, (1, 0, 2, 3))[:, :, ::-1, ::-1]
        y = lax.conv_general_dilated(
            x, w, window_strides=(1, 1),
            padding=[(k - 1 - pad, k - 1 - pad)] * 2,
            lhs_dilation=(stride, stride),
            dimension_numbers=("NCHW", "OIHW", "NCHW"))
        return y + b.reshape(1, -1, 1, 1)

    y = jax.nn.relu(convT(x, p["wt1"], p["bt1"][0], 2, 1))
    y = jax.nn.relu(convT(y, p["wt2"], p["bt2"][0], 2, 1))
    y = lax.conv_general_dilated(
        y, p["wc3"], window_strides=(1, 1), padding=[(1, 1), (1, 1)],
        dimension_numbers=("NCHW", "OIHW", "NCHW")) + p["bc3"].reshape(1, 1, 1, 1)
    conf = jax.nn.sigmoid(y)[:, 0]
    ry = _interp_matrix(conf.shape[1], patch_h * 14)
    rx = _interp_matrix(conf.shape[2], patch_w * 14)
    out = jnp.einsum("oh,bhw,pw->bop", ry, conf, rx)
    return out[:, None]


if __name__ == "__main__":
    key = jax.random.PRNGKey(0)
    embed_dim = 32
    B, N = 2, 8
    patch_h = patch_w = 8

    pkey, k0, k1, k2, k3 = jax.random.split(key, 5)
    params = init_params(pkey, embed_dim)
    prep = prepare_params(params)
    scale_features = [jax.random.normal(k, (B, N, embed_dim), jnp.float32)
                      for k in (k0, k1, k2, k3)]

    out = global_gradient_analyzer(scale_features, patch_h, patch_w, prep)
    out = jax.block_until_ready(out)
    assert out.shape == (B, 1, patch_h * 14, patch_w * 14), out.shape
    assert bool(jnp.all(jnp.isfinite(out)))

    ref = _reference_forward(scale_features, patch_h, patch_w, params)
    err = float(jnp.max(jnp.abs(out - ref)))
    assert err < 2e-4, f"max abs err {err}"
    print("KERNEL_OK")
</pallas_src>

<mosaic_0001>
module attributes {stable_mosaic.version = 11 : i64} {
  func.func @_analyzer_kernel(%arg0: memref<2x8x32xf32, #tpu.memory_space<vmem>>, %arg1: memref<2x8x32xf32, #tpu.memory_space<vmem>>, %arg2: memref<2x8x32xf32, #tpu.memory_space<vmem>>, %arg3: memref<2x8x32xf32, #tpu.memory_space<vmem>>, %arg4: memref<128x512xf32, #tpu.memory_space<vmem>>, %arg5: memref<1x512xf32, #tpu.memory_space<vmem>>, %arg6: memref<512x256xf32, #tpu.memory_space<vmem>>, %arg7: memref<1x256xf32, #tpu.memory_space<vmem>>, %arg8: memref<256x128xf32, #tpu.memory_space<vmem>>, %arg9: memref<1x128xf32, #tpu.memory_space<vmem>>, %arg10: memref<128x1024xf32, #tpu.memory_space<vmem>>, %arg11: memref<1x1024xf32, #tpu.memory_space<vmem>>, %arg12: memref<2x1024xf32, #tpu.memory_space<vmem>>) attributes {dimension_semantics = [], scalar_prefetch = 0 : i64, scratch_operands = 0 : i64, tpu.core_type = #tpu.core_type<tc>} {
    %c0 = arith.constant 0 : index
    %c0_0 = arith.constant 0 : index
    %c0_1 = arith.constant 0 : index
    %0 = vector.load %arg0[%c0, %c0_0, %c0_1] : memref<2x8x32xf32, #tpu.memory_space<vmem>>, vector<2x8x32xf32>
    %1 = vector.extract_strided_slice %0 {offsets = [0, 1, 0], sizes = [2, 7, 32], strides = [1, 1, 1]} : vector<2x8x32xf32> to vector<2x7x32xf32>
    %cst = arith.constant dense<0.000000e+00> : vector<2x32xf32>
    %2 = vector.multi_reduction <add>, %1, %cst [1] : vector<2x7x32xf32> to vector<2x32xf32>
    %cst_2 = arith.constant 7.000000e+00 : f32
    %3 = vector.broadcast %cst_2 : f32 to vector<2x32xf32>
    %4 = arith.divf %2, %3 : vector<2x32xf32>
    %c0_3 = arith.constant 0 : index
    %c0_4 = arith.constant 0 : index
    %c0_5 = arith.constant 0 : index
    %5 = vector.load %arg1[%c0_3, %c0_4, %c0_5] : memref<2x8x32xf32, #tpu.memory_space<vmem>>, vector<2x8x32xf32>
    %6 = vector.extract_strided_slice %5 {offsets = [0, 1, 0], sizes = [2, 7, 32], strides = [1, 1, 1]} : vector<2x8x32xf32> to vector<2x7x32xf32>
    %cst_6 = arith.constant dense<0.000000e+00> : vector<2x32xf32>
    %7 = vector.multi_reduction <add>, %6, %cst_6 [1] : vector<2x7x32xf32> to vector<2x32xf32>
    %cst_7 = arith.constant 7.000000e+00 : f32
    %8 = vector.broadcast %cst_7 : f32 to vector<2x32xf32>
    %9 = arith.divf %7, %8 : vector<2x32xf32>
    %c0_8 = arith.constant 0 : index
    %c0_9 = arith.constant 0 : index
    %c0_10 = arith.constant 0 : index
    %10 = vector.load %arg2[%c0_8, %c0_9, %c0_10] : memref<2x8x32xf32, #tpu.memory_space<vmem>>, vector<2x8x32xf32>
    %11 = vector.extract_strided_slice %10 {offsets = [0, 1, 0], sizes = [2, 7, 32], strides = [1, 1, 1]} : vector<2x8x32xf32> to vector<2x7x32xf32>
    %cst_11 = arith.constant dense<0.000000e+00> : vector<2x32xf32>
    %12 = vector.multi_reduction <add>, %11, %cst_11 [1] : vector<2x7x32xf32> to vector<2x32xf32>
    %cst_12 = arith.constant 7.000000e+00 : f32
    %13 = vector.broadcast %cst_12 : f32 to vector<2x32xf32>
    %14 = arith.divf %12, %13 : vector<2x32xf32>
    %c0_13 = arith.constant 0 : index
    %c0_14 = arith.constant 0 : index
    %c0_15 = arith.constant 0 : index
    %15 = vector.load %arg3[%c0_13, %c0_14, %c0_15] : memref<2x8x32xf32, #tpu.memory_space<vmem>>, vector<2x8x32xf32>
    %16 = vector.extract_strided_slice %15 {offsets = [0, 1, 0], sizes = [2, 7, 32], strides = [1, 1, 1]} : vector<2x8x32xf32> to vector<2x7x32xf32>
    %cst_16 = arith.constant dense<0.000000e+00> : vector<2x32xf32>
    %17 = vector.multi_reduction <add>, %16, %cst_16 [1] : vector<2x7x32xf32> to vector<2x32xf32>
    %cst_17 = arith.constant 7.000000e+00 : f32
    %18 = vector.broadcast %cst_17 : f32 to vector<2x32xf32>
    %19 = arith.divf %17, %18 : vector<2x32xf32>
    %20 = tpu.concatenate %4, %9, %14, %19 in 1 : vector<2x32xf32>, vector<2x32xf32>, vector<2x32xf32>, vector<2x32xf32> -> vector<2x128xf32>
    %c0_18 = arith.constant 0 : index
    %c0_19 = arith.constant 0 : index
    %21 = vector.load %arg4[%c0_18, %c0_19] : memref<128x512xf32, #tpu.memory_space<vmem>>, vector<128x512xf32>
    %cst_20 = arith.constant dense<0.000000e+00> : vector<2x512xf32>
    %22 = tpu.matmul %20, %21, %cst_20 {dimension_numbers = #tpu.dot_dimension_numbers<[1], [0], [0], [1], [0, 0, 1, 1], [], []>} : vector<2x128xf32>, vector<128x512xf32>, vector<2x512xf32> -> vector<2x512xf32>
    %c0_21 = arith.constant 0 : index
    %c0_22 = arith.constant 0 : index
    %23 = vector.load %arg5[%c0_21, %c0_22] : memref<1x512xf32, #tpu.memory_space<vmem>>, vector<1x512xf32>
    %24 = vector.broadcast %23 : vector<1x512xf32> to vector<2x512xf32>
    %25 = arith.addf %22, %24 : vector<2x512xf32>
    %cst_23 = arith.constant 0.000000e+00 : f32
    %26 = vector.broadcast %cst_23 : f32 to vector<2x512xf32>
    %27 = arith.maximumf %25, %26 : vector<2x512xf32>
    %c0_24 = arith.constant 0 : index
    %c0_25 = arith.constant 0 : index
    %28 = vector.load %arg6[%c0_24, %c0_25] : memref<512x256xf32, #tpu.memory_space<vmem>>, vector<512x256xf32>
    %cst_26 = arith.constant dense<0.000000e+00> : vector<2x256xf32>
    %29 = tpu.matmul %27, %28, %cst_26 {dimension_numbers = #tpu.dot_dimension_numbers<[1], [0], [0], [1], [0, 0, 1, 1], [], []>} : vector<2x512xf32>, vector<512x256xf32>, vector<2x256xf32> -> vector<2x256xf32>
    %c0_27 = arith.constant 0 : index
    %c0_28 = arith.constant 0 : index
    %30 = vector.load %arg7[%c0_27, %c0_28] : memref<1x256xf32, #tpu.memory_space<vmem>>, vector<1x256xf32>
    %31 = vector.broadcast %30 : vector<1x256xf32> to vector<2x256xf32>
    %32 = arith.addf %29, %31 : vector<2x256xf32>
    %cst_29 = arith.constant 0.000000e+00 : f32
    %33 = vector.broadcast %cst_29 : f32 to vector<2x256xf32>
    %34 = arith.maximumf %32, %33 : vector<2x256xf32>
    %c0_30 = arith.constant 0 : index
    %c0_31 = arith.constant 0 : index
    %35 = vector.load %arg8[%c0_30, %c0_31] : memref<256x128xf32, #tpu.memory_space<vmem>>, vector<256x128xf32>
    %cst_32 = arith.constant dense<0.000000e+00> : vector<2x128xf32>
    %36 = tpu.matmul %34, %35, %cst_32 {dimension_numbers = #tpu.dot_dimension_numbers<[1], [0], [0], [1], [0, 0, 1, 1], [], []>} : vector<2x256xf32>, vector<256x128xf32>, vector<2x128xf32> -> vector<2x128xf32>
    %c0_33 = arith.constant 0 : index
    %c0_34 = arith.constant 0 : index
    %37 = vector.load %arg9[%c0_33, %c0_34] : memref<1x128xf32, #tpu.memory_space<vmem>>, vector<1x128xf32>
    %38 = vector.broadcast %37 : vector<1x128xf32> to vector<2x128xf32>
    %39 = arith.addf %36, %38 : vector<2x128xf32>
    %c0_35 = arith.constant 0 : index
    %c0_36 = arith.constant 0 : index
    %40 = vector.load %arg10[%c0_35, %c0_36] : memref<128x1024xf32, #tpu.memory_space<vmem>>, vector<128x1024xf32>
    %cst_37 = arith.constant dense<0.000000e+00> : vector<2x1024xf32>
    %41 = tpu.matmul %39, %40, %cst_37 {dimension_numbers = #tpu.dot_dimension_numbers<[1], [0], [0], [1], [0, 0, 1, 1], [], []>} : vector<2x128xf32>, vector<128x1024xf32>, vector<2x1024xf32> -> vector<2x1024xf32>
    %c0_38 = arith.constant 0 : index
    %c0_39 = arith.constant 0 : index
    %42 = vector.load %arg11[%c0_38, %c0_39] : memref<1x1024xf32, #tpu.memory_space<vmem>>, vector<1x1024xf32>
    %43 = vector.broadcast %42 : vector<1x1024xf32> to vector<2x1024xf32>
    %44 = arith.addf %41, %43 : vector<2x1024xf32>
    %cst_40 = arith.constant 0.000000e+00 : f32
    %45 = vector.broadcast %cst_40 : f32 to vector<2x1024xf32>
    %46 = arith.maximumf %44, %45 : vector<2x1024xf32>
    %c0_41 = arith.constant 0 : index
    %c0_42 = arith.constant 0 : index
    %47 = vector.load %arg12[%c0_41, %c0_42] : memref<2x1024xf32, #tpu.memory_space<vmem>>, vector<2x1024xf32>
    tpu.vector_store %arg12[%c0_41, %c0_42], %46 {strides = array<i32>} : memref<2x1024xf32, #tpu.memory_space<vmem>>, vector<2x1024xf32>,
    return
  }
}

</mosaic_0001>

<bundles_post_ra>
// kernel: tpu_custom_call.1
= control target key start
LH: loop header
LB: loop body
LE: loop exit
PB: predicated region body
PF: predicated region fallthrough
CT: control target
= control target key end

     0   :  { %17 = vsyncpa [#allocation3], 0  ;;  %s2352_s0 = inlined_call_operand.hbm [shape: f32[2,8,32], index: 0, kind: input, shape index: {}]   ;;  %s2353_s1 = inlined_call_operand.hbm [shape: f32[2,8,32], index: 1, kind: input, shape index: {}]   ;;  %s2354_s2 = inlined_call_operand.hbm [shape: f32[2,8,32], index: 2, kind: input, shape index: {}]   ;;  %s2355_s3 = inlined_call_operand.hbm [shape: f32[2,8,32], index: 3, kind: input, shape index: {}]   ;;  %s2356_s4 = inlined_call_operand.hbm [shape: f32[128,512], index: 4, kind: input, shape index: {}]   ;;  %s2357_s5 = inlined_call_operand.vmem [shape: f32[1,512], index: 5, kind: input, shape index: {}]   ;;  %s2358_s6 = inlined_call_operand.hbm [shape: f32[512,256], index: 6, kind: input, shape index: {}]   ;;  %s2359_s7 = inlined_call_operand.vmem [shape: f32[1,256], index: 7, kind: input, shape index: {}]   ;;  %s2360_s8 = inlined_call_operand.hbm [shape: f32[256,128], index: 8, kind: input, shape index: {}]   ;;  %s2361_s9 = inlined_call_operand.vmem [shape: f32[1,128], index: 9, kind: input, shape index: {}]   ;;  %s2362_s10 = inlined_call_operand.hbm [shape: f32[128,1024], index: 10, kind: input, shape index: {}]   ;;  %s2363_s11 = inlined_call_operand.vmem [shape: f32[1,1024], index: 11, kind: input, shape index: {}]   ;;  %s2364_s12 = inlined_call_operand.hbm [shape: f32[2,1024], index: 12, kind: output, shape index: {}]  }
   0x1   :  { %18 = vsyncpa [#allocation6], 0 }
   0x2   :  { %19 = vsyncpa [#allocation9], 0 }
   0x3   :  { %20 = vsyncpa [#allocation12], 0 }
   0x4   :  { %21 = vsyncpa [#allocation15], 0 }
   0x5   :  { %22 = vsyncpa [#allocation4], 0  ;;  %s2052_s21 = smov [#allocation5]   ;;  %s2053_s23 = smov [#allocation8]  }
   0x6   :  { %s40_s22 = sshll.u32 %s2052_s21, 4  ;;  %s64_s24 = sshll.u32 %s2053_s23, 4  ;;  %s41_s22 = int_to_ptr.vmem [resolvable:$true] %s40_s22  ;;  %s2137_s24 = int_to_ptr.vmem [resolvable:$true] %s64_s24 }
   0x7   :  { %s1842_s27 = scalar_lea.hbm %s2353_s1, 256 }
   0x8   :  { %p1843_p0 = scmp.ne.s32.totalorder %s2353_s1, %s1842_s27  ;;  %p1846_p1 = scmp.lt.u32.totalorder %s1842_s27, %s2353_s1 }
   0xa   :  { %p1848_p2 = pnand %p1846_p1, %p1843_p0 }
   0xc   :  { %1851 = shalt.err (!%p1848_p2)
}
   0xd   :  { %s1852_s14 = scalar_lea.vmem %s41_s22, 256  ;;  %p1857_p4 = scmp.lt.s32.totalorder %s41_s22, %s41_s22 }
   0xe   :  { %p1853_p3 = scmp.ne.s32.totalorder %s41_s22, %s1852_s14  ;;  %p1858_p5 = scmp.lt.s32.totalorder %s1852_s14, %s1852_s14 }
  0x10   :  { %p1859_p6 = por %p1858_p5, %p1857_p4 }
  0x12   :  { %p1860_p7 = pnand %p1859_p6, %p1853_p3 }
  0x14   :  { %1863 = shalt.err (!%p1860_p7)
}
  0x15   :  { %s2054_s15 = smov 128   ;;  %s2055_s16 = smov 8  }
  0x16   :  { %46 = dma.hbm_to_vmem [thread:$0]  %s2353_s1, 256, %s41_s22, [#allocation6], %s2054_s15, %s2054_s15, %s2055_s16  }
  0x17   :  { %s1864_s21 = scalar_lea.hbm %s2355_s3, 256 }
  0x18   :  { %p1865_p8 = scmp.ne.s32.totalorder %s2355_s3, %s1864_s21  ;;  %p1868_p9 = scmp.lt.u32.totalorder %s1864_s21, %s2355_s3 }
  0x1a   :  { %p1870_p10 = pnand %p1868_p9, %p1865_p8 }
  0x1c   :  { %1873 = shalt.err (!%p1870_p10)
}
  0x1d   :  { %s1874_s28 = scalar_lea.vmem %s2137_s24, 256  ;;  %p1879_p12 = scmp.lt.s32.totalorder %s2137_s24, %s2137_s24 }
  0x1e   :  { %p1875_p11 = scmp.ne.s32.totalorder %s2137_s24, %s1874_s28  ;;  %p1880_p13 = scmp.lt.s32.totalorder %s1874_s28, %s1874_s28 }
  0x20   :  { %p1881_p0 = por %p1880_p13, %p1879_p12 }
  0x22   :  { %p1882_p1 = pnand %p1881_p0, %p1875_p11 }
  0x24   :  { %1885 = shalt.err (!%p1882_p1)
}
  0x25   :  { %70 = dma.hbm_to_vmem [thread:$0]  %s2355_s3, 256, %s2137_s24, [#allocation9], %s2054_s15, %s2054_s15, %s2055_s16  }
  0x26   :  { %s2056_s29 = smov [#allocation11]   ;;  %s1886_s17 = scalar_lea.hbm %s2358_s6, 16384 }
  0x27   :  { %s90_s30 = sshll.u32 %s2056_s29, 4  ;;  %p1887_p2 = scmp.ne.s32.totalorder %s2358_s6, %s1886_s17  ;;  %s91_s30 = int_to_ptr.vmem [resolvable:$true] %s90_s30 }
  0x28   :  { %p1890_p3 = scmp.lt.u32.totalorder %s1886_s17, %s2358_s6 }
  0x2a   :  { %p1892_p4 = pnand %p1890_p3, %p1887_p2 }
  0x2c   :  { %1895 = shalt.err (!%p1892_p4)
}
  0x2d   :  { %s1896_s23 = scalar_lea.vmem %s91_s30, 16384  ;;  %p1901_p6 = scmp.lt.s32.totalorder %s91_s30, %s91_s30 }
  0x2e   :  { %p1897_p5 = scmp.ne.s32.totalorder %s91_s30, %s1896_s23  ;;  %p1902_p7 = scmp.lt.s32.totalorder %s1896_s23, %s1896_s23 }
  0x30   :  { %p1903_p8 = por %p1902_p7, %p1901_p6 }
  0x32   :  { %p1904_p9 = pnand %p1903_p8, %p1897_p5 }
  0x34   :  { %1907 = shalt.err (!%p1904_p9)
}
  0x35   :  { %s2057_s3 = smov 256   ;;  %s2058_s24 = smov 16  }
  0x36   :  { %96 = dma.hbm_to_vmem [thread:$0]  %s2358_s6, 16384, %s91_s30, [#allocation12], %s2057_s3, %s2057_s3, %s2058_s24  }
  0x37   :  { %s2059_s27 = smov [#allocation2]   ;;  %s2060_s1 = smov [#allocation7]  }
  0x38   :  { %s28_s28 = sshll.u32 %s2059_s27, 4  ;;  %s52_s22 = sshll.u32 %s2060_s1, 4  ;;  %s29_s28 = int_to_ptr.vmem [resolvable:$true] %s28_s28  ;;  %s53_s22 = int_to_ptr.vmem [resolvable:$true] %s52_s22 }
  0x39   :  { %s1908_s14 = scalar_lea.hbm %s2352_s0, 256 }
  0x3a   :  { %p1909_p10 = scmp.ne.s32.totalorder %s2352_s0, %s1908_s14  ;;  %p1912_p11 = scmp.lt.u32.totalorder %s1908_s14, %s2352_s0 }
  0x3c   :  { %p1914_p12 = pnand %p1912_p11, %p1909_p10 }
  0x3e   :  { %1917 = shalt.err (!%p1914_p12)
}
  0x3f   :  { %s1918_s6 = scalar_lea.vmem %s29_s28, 256  ;;  %p1923_p0 = scmp.lt.s32.totalorder %s29_s28, %s29_s28 }
  0x40   :  { %p1919_p13 = scmp.ne.s32.totalorder %s29_s28, %s1918_s6  ;;  %p1924_p1 = scmp.lt.s32.totalorder %s1918_s6, %s1918_s6 }
  0x42   :  { %p1925_p2 = por %p1924_p1, %p1923_p0 }
  0x44   :  { %p1926_p3 = pnand %p1925_p2, %p1919_p13 }
  0x46   :  { %1929 = shalt.err (!%p1926_p3)
}
  0x47   :  { %34 = dma.hbm_to_vmem [thread:$0]  %s2352_s0, 256, %s29_s28, [#allocation3], %s2054_s15, %s2054_s15, %s2055_s16  }
  0x48   :  { %s1930_s24 = scalar_lea.hbm %s2354_s2, 256 }
  0x49   :  { %p1931_p4 = scmp.ne.s32.totalorder %s2354_s2, %s1930_s24  ;;  %p1934_p5 = scmp.lt.u32.totalorder %s1930_s24, %s2354_s2 }
  0x4b   :  { %p1936_p6 = pnand %p1934_p5, %p1931_p4 }
  0x4d   :  { %1939 = shalt.err (!%p1936_p6)
}
  0x4e   :  { %s1940_s29 = scalar_lea.vmem %s53_s22, 256  ;;  %p1945_p8 = scmp.lt.s32.totalorder %s53_s22, %s53_s22 }
  0x4f   :  { %p1941_p7 = scmp.ne.s32.totalorder %s53_s22, %s1940_s29  ;;  %p1946_p9 = scmp.lt.s32.totalorder %s1940_s29, %s1940_s29 }
  0x51   :  { %p1947_p10 = por %p1946_p9, %p1945_p8 }
  0x53   :  { %p1948_p11 = pnand %p1947_p10, %p1941_p7 }
  0x55   :  { %1951 = shalt.err (!%p1948_p11)
}
  0x56   :  { %58 = dma.hbm_to_vmem [thread:$0]  %s2354_s2, 256, %s53_s22, [#allocation6], %s2054_s15, %s2054_s15, %s2055_s16  }
  0x57   :  { %s2061_s13 = smov [#allocation10]   ;;  %s1952_s19 = scalar_lea.hbm %s2356_s4, 8192 }
  0x58   :  { %s76_s14 = sshll.u32 %s2061_s13, 4  ;;  %p1953_p12 = scmp.ne.s32.totalorder %s2356_s4, %s1952_s19  ;;  %s77_s14 = int_to_ptr.vmem [resolvable:$true] %s76_s14 }
  0x59   :  { %p1956_p13 = scmp.lt.u32.totalorder %s1952_s19, %s2356_s4 }
  0x5b   :  { %p1958_p0 = pnand %p1956_p13, %p1953_p12 }
  0x5d   :  { %1961 = shalt.err (!%p1958_p0)
}
  0x5e   :  { %s1962_s23 = scalar_lea.vmem %s77_s14, 8192  ;;  %p1967_p2 = scmp.lt.s32.totalorder %s77_s14, %s77_s14 }
  0x5f   :  { %p1963_p1 = scmp.ne.s32.totalorder %s77_s14, %s1962_s23  ;;  %p1968_p3 = scmp.lt.s32.totalorder %s1962_s23, %s1962_s23 }
  0x61   :  { %p1969_p4 = por %p1968_p3, %p1967_p2 }
  0x63   :  { %p1970_p5 = pnand %p1969_p4, %p1963_p1 }
  0x65   :  { %1973 = shalt.err (!%p1970_p5)
}
  0x66   :  { %s2062_s2 = smov 512   ;;  %s2063_s22 = smov 32  }
  0x67   :  { %82 = dma.hbm_to_vmem [thread:$0]  %s2356_s4, 8192, %s77_s14, [#allocation9], %s2062_s2, %s2062_s2, %s2063_s22  }
  0x68   :  { %s2064_s25 = smov [#allocation13]   ;;  %s2065_s27 = smov [#allocation14]  }
  0x69   :  { %s104_s26 = sshll.u32 %s2064_s25, 4  ;;  %s118_s1 = sshll.u32 %s2065_s27, 4  ;;  %s105_s26 = int_to_ptr.vmem [resolvable:$true] %s104_s26  ;;  %s2229_s1 = int_to_ptr.vmem [resolvable:$true] %s118_s1 }
  0x6a   :  { %s1974_s28 = scalar_lea.hbm %s2360_s8, 4096 }
  0x6b   :  { %p1975_p6 = scmp.ne.s32.totalorder %s2360_s8, %s1974_s28  ;;  %p1978_p7 = scmp.lt.u32.totalorder %s1974_s28, %s2360_s8 }
  0x6d   :  { %p1980_p8 = pnand %p1978_p7, %p1975_p6 }
  0x6f   :  { %1983 = shalt.err (!%p1980_p8)
}
  0x70   :  { %s1984_s4 = scalar_lea.vmem %s105_s26, 4096  ;;  %p1989_p10 = scmp.lt.s32.totalorder %s105_s26, %s105_s26 }
  0x71   :  { %p1985_p9 = scmp.ne.s32.totalorder %s105_s26, %s1984_s4  ;;  %p1990_p11 = scmp.lt.s32.totalorder %s1984_s4, %s1984_s4 }
  0x73   :  { %p1991_p12 = por %p1990_p11, %p1989_p10 }
  0x75   :  { %p1992_p13 = pnand %p1991_p12, %p1985_p9 }
  0x77   :  { %1995 = shalt.err (!%p1992_p13)
}
  0x78   :  { %110 = dma.hbm_to_vmem [thread:$0]  %s2360_s8, 4096, %s105_s26, [#allocation12], %s2054_s15, %s2054_s15, %s2055_s16  }
  0x79   :  { %s1996_s21 = scalar_lea.hbm %s2362_s10, 16384 }
  0x7a   :  { %p1997_p0 = scmp.ne.s32.totalorder %s2362_s10, %s1996_s21  ;;  %p2000_p1 = scmp.lt.u32.totalorder %s1996_s21, %s2362_s10 }
  0x7c   :  { %p2002_p2 = pnand %p2000_p1, %p1997_p0 }
  0x7e   :  { %2005 = shalt.err (!%p2002_p2)
}
  0x7f   :  { %s2006_s25 = scalar_lea.vmem %s2229_s1, 16384  ;;  %p2011_p4 = scmp.lt.s32.totalorder %s2229_s1, %s2229_s1 }
  0x80   :  { %p2007_p3 = scmp.ne.s32.totalorder %s2229_s1, %s2006_s25  ;;  %p2012_p5 = scmp.lt.s32.totalorder %s2006_s25, %s2006_s25 }
  0x82   :  { %p2013_p6 = por %p2012_p5, %p2011_p4 }
  0x84   :  { %p2014_p7 = pnand %p2013_p6, %p2007_p3 }
  0x86   :  { %2017 = shalt.err (!%p2014_p7)
}
  0x87   :  { %s2066_s8 = smov 1024   ;;  %s2067_s15 = smov 64  }
  0x88   :  { %124 = dma.hbm_to_vmem [thread:$0]  %s2362_s10, 16384, %s2229_s1, [#allocation15], %s2066_s8, %s2066_s8, %s2067_s15  }
  0x89   :  { %2040 = dma.done.wait [#allocation3], 256  }
  0x8a   :  { %2041 = vsyncadd [#allocation3], 4294967040 }
  0x8b   :  { %2042 = dma.done.wait [#allocation6], 512  }
  0x8c   :  { %2043 = vsyncadd [#allocation6], 4294966784 }
  0x8d   :  { %2044 = dma.done.wait [#allocation9], 8448  }
  0x8e   :  { %2045 = vsyncadd [#allocation9], 4294958848 }
  0x8f   :  { %2046 = dma.done.wait [#allocation12], 20480  }
  0x90   :  { %2047 = vsyncadd [#allocation12], 4294946816 }
  0x91   :  { %2048 = dma.done.wait [#allocation15], 16384  }
  0x92   :  { %2049 = vsyncadd [#allocation15], 4294950912  ;;  %vm159_vm0 = vcmask 260096   ;;  %v177_v0 = vld [vmem:[#allocation5] sm:$0xff]  ;;  %v178_v1 = vld [vmem:[#allocation5 + $0x8] sm:$0xff]  ;;  %vm251_vm1 = vcmask 1041409  }
  0x93   :  { %v201_v2 = vld [vmem:[#allocation7] sm:$0xff]  ;;  %v181_v3 = vrot.slane %v177_v0, 1  ;;  %v182_v4 = vrot.slane %v178_v1, 1  ;;  %v202_v5 = vld [vmem:[#allocation7 + $0x8] sm:$0xff]  ;;  %v225_v7 = vld [vmem:[#allocation8] sm:$0xff]  ;;  %s2068_s10 = smov 96  }
  0x94   :  { %v205_v6 = vrot.slane %v201_v2, 1  ;;  %v226_v8 = vld [vmem:[#allocation8 + $0x8] sm:$0xff]  ;;  %v206_v9 = vrot.slane %v202_v5, 1  ;;  %v229_v10 = vrot.slane %v225_v7, 1  ;;  %v279_v12 = vld [vmem:[#allocation10 + $0x8] sm:$0xff]  ;;  %v278_v20 = vld [vmem:[#allocation10] sm:$0xff] }
  0x95   :  { %v230_v11 = vrot.slane %v226_v8, 1  ;;  %v283_v13 = vld [vmem:[#allocation10 + $0x28] sm:$0xff]  ;;  %v281_v14 = vld [vmem:[#allocation10 + $0x18] sm:$0xff]  ;;  %v185_v15 = vsel %vm159_vm0, %v181_v3, 0.0  ;;  %v192_v16 = vsel %vm159_vm0, %v182_v4, 0.0  ;;  %v282_v21 = vld [vmem:[#allocation10 + $0x20] sm:$0xff] }
  0x96   :  { %v209_v17 = vsel %vm159_vm0, %v205_v6, 0.0  ;;  %v1466_v18 = vpack.c.bf16 %v283_v13, %v279_v12  ;;  %v285_v19 = vld [vmem:[#allocation10 + $0x38] sm:$0xff]  ;;  %v186_v22 = vrot.slane %v185_v15, 4  ;;  %v193_v23 = vrot.slane %v192_v16, 4  ;;  %v280_v26 = vld [vmem:[#allocation10 + $0x10] sm:$0xff]  ;;  %v287_v32 = vld [vmem:[#allocation10 + $0x48] sm:$0xff] }
  0x97   :  { %v210_v24 = vrot.slane %v209_v17, 4  ;;  %v216_v25 = vsel %vm159_vm0, %v206_v9, 0.0  ;;  %v284_v27 = vld [vmem:[#allocation10 + $0x30] sm:$0xff]  ;;  %v233_v29 = vsel %vm159_vm0, %v229_v10, 0.0  ;;  %v240_v30 = vsel %vm159_vm0, %v230_v11, 0.0  ;;  %v291_v37 = vld [vmem:[#allocation10 + $0x68] sm:$0xff] }
  0x98   :  { %v217_v28 = vrot.slane %v216_v25, 4  ;;  %1467 = vmatprep.subr.bf16.mxu0 %v1466_v18  ;;  %v1498_v31 = vpack.c.bf16 %v285_v19, %v281_v14  ;;  %v187_v33 = vadd.f32 %v186_v22, %v185_v15  ;;  %v194_v34 = vadd.f32 %v193_v23, %v192_v16  ;;  %v289_v38 = vld [vmem:[#allocation10 + $0x58] sm:$0xff]  ;;  %v286_v44 = vld [vmem:[#allocation10 + $0x40] sm:$0xff]  ;;  %v288_v50 = vld [vmem:[#allocation10 + $0x50] sm:$0xff] }
  0x99   :  { %v211_v35 = vadd.f32 %v210_v24, %v209_v17  ;;  %v234_v36 = vrot.slane %v233_v29, 4  ;;  %v293_v39 = vld [vmem:[#allocation10 + $0x78] sm:$0xff]  ;;  %v241_v41 = vrot.slane %v240_v30, 4  ;;  %v1468_v42 = vpack.c.bf16 %v282_v21, %v278_v20  ;;  %v290_v49 = vld [vmem:[#allocation10 + $0x60] sm:$0xff]  ;;  %v292_v51 = vld [vmem:[#allocation10 + $0x70] sm:$0xff] }
  0x9a   :  { %v218_v40 = vadd.f32 %v217_v28, %v216_v25  ;;  %1499 = vmatprep.subr.bf16.mxu1 %v1498_v31  ;;  %v1500_v43 = vpack.c.bf16 %v284_v27, %v280_v26  ;;  %v188_v45 = vrot.slane %v187_v33, 2  ;;  %v195_v46 = vrot.slane %v194_v34, 2  ;;  %v295_v56 = vld [vmem:[#allocation10 + $0x88] sm:$0xff]  ;;  %v297_v62 = vld [vmem:[#allocation10 + $0x98] sm:$0xff]  ;;  %v294_v0 = vld [vmem:[#allocation10 + $0x80] sm:$0xff] }
  0x9b   :  { %v212_v47 = vrot.slane %v211_v35, 2  ;;  %v235_v48 = vadd.f32 %v234_v36, %v233_v29  ;;  %v242_v53 = vadd.f32 %v241_v41, %v240_v30  ;;  %1469 = vmatpush1.bf16.msra.mxu0 %v1468_v42  ;;  %v1470_v54 = vpack.c.bf16 %v291_v37, %v287_v32  ;;  %v299_v57 = vld [vmem:[#allocation10 + $0xa8] sm:$0xff]  ;;  %v301_v63 = vld [vmem:[#allocation10 + $0xb8] sm:$0xff]  ;;  %v298_v5 = vld [vmem:[#allocation10 + $0xa0] sm:$0xff] }
  0x9c   :  { %v219_v52 = vrot.slane %v218_v40, 2  ;;  %1501 = vmatpush1.bf16.msra.mxu1 %v1500_v43  ;;  %v1502_v55 = vpack.c.bf16 %v293_v39, %v289_v38  ;;  %v189_v58 = vadd.f32 %v188_v45, %v187_v33  ;;  %v196_v59 = vadd.f32 %v195_v46, %v194_v34  ;;  %v296_v6 = vld [vmem:[#allocation10 + $0x90] sm:$0xff]  ;;  %v303_v12 = vld [vmem:[#allocation10 + $0xc8] sm:$0xff]  ;;  %v305_v14 = vld [vmem:[#allocation10 + $0xd8] sm:$0xff] }
  0x9d   :  { %v213_v60 = vadd.f32 %v212_v47, %v211_v35  ;;  %v236_v61 = vrot.slane %v235_v48, 2  ;;  %v243_v2 = vrot.slane %v242_v53, 2  ;;  %1471 = vmatprep.subr.bf16.mxu0 %v1470_v54  ;;  %v1472_v3 = vpack.c.bf16 %v290_v49, %v286_v44  ;;  %v300_v7 = vld [vmem:[#allocation10 + $0xb0] sm:$0xff]  ;;  %v307_v13 = vld [vmem:[#allocation10 + $0xe8] sm:$0xff]  ;;  %v309_v19 = vld [vmem:[#allocation10 + $0xf8] sm:$0xff] }
  0x9e   :  { %v220_v1 = vadd.f32 %v219_v52, %v218_v40  ;;  %1503 = vmatprep.subr.bf16.mxu1 %v1502_v55  ;;  %v1504_v4 = vpack.c.bf16 %v292_v51, %v288_v50  ;;  %v190_v8 = vrot.slane %v189_v58, 1  ;;  %v197_v9 = vrot.slane %v196_v59, 1  ;;  %v302_v20 = vld [vmem:[#allocation10 + $0xc0] sm:$0xff]  ;;  %v304_v26 = vld [vmem:[#allocation10 + $0xd0] sm:$0xff]  ;;  %v311_v28 = vld [vmem:[#allocation10 + $0x108] sm:$0xff] }
  0x9f   :  { %v214_v10 = vrot.slane %v213_v60, 1  ;;  %v237_v11 = vadd.f32 %v236_v61, %v235_v48  ;;  %v244_v16 = vadd.f32 %v243_v2, %v242_v53  ;;  %1473 = vmatpush1.bf16.msra.mxu0 %v1472_v3  ;;  %v1474_v17 = vpack.c.bf16 %v299_v57, %v295_v56  ;;  %v306_v21 = vld [vmem:[#allocation10 + $0xe0] sm:$0xff]  ;;  %v308_v27 = vld [vmem:[#allocation10 + $0xf0] sm:$0xff]  ;;  %v315_v33 = vld [vmem:[#allocation10 + $0x128] sm:$0xff] }
  0xa0   :  { %v221_v15 = vrot.slane %v220_v1, 1  ;;  %1505 = vmatpush1.bf16.msra.mxu1 %v1504_v4  ;;  %v1506_v18 = vpack.c.bf16 %v301_v63, %v297_v62  ;;  %v191_v22 = vadd.f32 %v190_v8, %v189_v58  ;;  %v198_v23 = vadd.f32 %v197_v9, %v196_v59  ;;  %v313_v34 = vld [vmem:[#allocation10 + $0x118] sm:$0xff]  ;;  %v310_v44 = vld [vmem:[#allocation10 + $0x100] sm:$0xff]  ;;  %v312_v50 = vld [vmem:[#allocation10 + $0x110] sm:$0xff] }
  0xa1   :  { %v215_v24 = vadd.f32 %v214_v10, %v213_v60  ;;  %v238_v25 = vrot.slane %v237_v11, 1  ;;  %v245_v30 = vrot.slane %v244_v16, 1  ;;  %1475 = vmatprep.subr.bf16.mxu0 %v1474_v17  ;;  %v1476_v31 = vpack.c.bf16 %v298_v5, %v294_v0  ;;  %v317_v35 = vld [vmem:[#allocation10 + $0x138] sm:$0xff]  ;;  %v314_v45 = vld [vmem:[#allocation10 + $0x120] sm:$0xff]  ;;  %v316_v51 = vld [vmem:[#allocation10 + $0x130] sm:$0xff] }
  0xa2   :  { %v222_v29 = vadd.f32 %v221_v15, %v220_v1  ;;  %1507 = vmatprep.subr.bf16.mxu1 %v1506_v18  ;;  %v1508_v32 = vpack.c.bf16 %v300_v7, %v296_v6  ;;  %v199_v36 = vmul.f32 0.14285715, %v191_v22  ;;  %v200_v37 = vmul.f32 0.14285715, %v198_v23  ;;  %v319_v52 = vld [vmem:[#allocation10 + $0x148] sm:$0xff]  ;;  %v321_v57 = vld [vmem:[#allocation10 + $0x158] sm:$0xff] }
  0xa3   :  { %v223_v38 = vmul.f32 0.14285715, %v215_v24  ;;  %v239_v39 = vadd.f32 %v238_v25, %v237_v11  ;;  %v246_v41 = vadd.f32 %v245_v30, %v244_v16  ;;  %1477 = vmatpush1.bf16.msra.mxu0 %v1476_v31  ;;  %v1478_v42 = vpack.c.bf16 %v307_v13, %v303_v12  ;;  %v323_v56 = vld [vmem:[#allocation10 + $0x168] sm:$0xff]  ;;  %v325_v58 = vld [vmem:[#allocation10 + $0x178] sm:$0xff]  ;;  %v318_v60 = vld [vmem:[#allocation10 + $0x140] sm:$0xff] }
  0xa4   :  { %v224_v40 = vmul.f32 0.14285715, %v222_v29  ;;  %1509 = vmatpush1.bf16.msra.mxu1 %v1508_v32  ;;  %v1510_v43 = vpack.c.bf16 %v309_v19, %v305_v14  ;;  %v256_v46 = vsel %vm251_vm1, %v200_v37, %v199_v36  ;;  %v1480_v48 = vpack.c.bf16 %v306_v21, %v302_v20  ;;  %v322_v0 = vld [vmem:[#allocation10 + $0x160] sm:$0xff]  ;;  %v320_v1 = vld [vmem:[#allocation10 + $0x150] sm:$0xff]  ;;  %v327_v5 = vld [vmem:[#allocation10 + $0x188] sm:$0xff] }
  0xa5   :  { %v247_v47 = vmul.f32 0.14285715, %v239_v39  ;;  %v1512_v49 = vpack.c.bf16 %v308_v27, %v304_v26  ;;  %257 = vrot.lane.b32.xlu0 %v256_v46, %s2063_s22  ;;  %v248_v53 = vmul.f32 0.14285715, %v246_v41  ;;  %1479 = vmatprep.subr.bf16.mxu0 %v1478_v42  ;;  %v1482_v54 = vpack.c.bf16 %v315_v33, %v311_v28  ;;  %v324_v2 = vld [vmem:[#allocation10 + $0x170] sm:$0xff]  ;;  %v151_v6 = vld [vmem:[#allocation2] sm:$0xff] }
  0xa6   :  { %v1514_v55 = vpack.c.bf16 %v317_v35, %v313_v34  ;;  %v262_v59 = vsel %vm251_vm1, %v224_v40, %v223_v38  ;;  %1511 = vmatprep.subr.bf16.mxu1 %v1510_v43  ;;  %v1484_v62 = vpack.c.bf16 %v314_v45, %v310_v44  ;;  %v1516_v63 = vpack.c.bf16 %v316_v51, %v312_v50  ;;  %v152_v7 = vld [vmem:[#allocation2 + $0x8] sm:$0xff]  ;;  %v329_v9 = vld [vmem:[#allocation10 + $0x198] sm:$0xff]  ;;  %v326_v16 = vld [vmem:[#allocation10 + $0x180] sm:$0xff] }
  0xa7   :  { %v268_v61 = vsel %vm251_vm1, %v248_v53, %v247_v47  ;;  %1481 = vmatpush1.bf16.msra.mxu0 %v1480_v48  ;;  %v1486_v3 = vpack.c.bf16 %v323_v56, %v319_v52  ;;  %v1518_v4 = vpack.c.bf16 %v325_v58, %v321_v57  ;;  %v331_v8 = vld [vmem:[#allocation10 + $0x1a8] sm:$0xff]  ;;  %v333_v10 = vld [vmem:[#allocation10 + $0x1b8] sm:$0xff]  ;;  %v155_v11 = vrot.slane %v151_v6, 1  ;;  %v330_v17 = vld [vmem:[#allocation10 + $0x1a0] sm:$0xff] }
  0xa8   :  { %1513 = vmatpush1.bf16.msra.mxu1 %v1512_v49  ;;  %269 = vrot.lane.b32.xlu1 %v268_v61, %s2068_s10  ;;  %v156_v12 = vrot.slane %v152_v7, 1  ;;  %v2069_v13 = vmov 0.0   ;;  %v1488_v14 = vpack.c.bf16 %v322_v0, %v318_v60  ;;  %v1520_v15 = vpack.c.bf16 %v324_v2, %v320_v1  ;;  %v328_v22 = vld [vmem:[#allocation10 + $0x190] sm:$0xff]  ;;  %v335_v26 = vld [vmem:[#allocation10 + $0x1c8] sm:$0xff]  ;;  %v337_v28 = vld [vmem:[#allocation10 + $0x1d8] sm:$0xff] }
  0xa9   :  { %1483 = vmatprep.subr.bf16.mxu0 %v1482_v54  ;;  %263 = vrot.lane.b32.xlu0 %v262_v59, %s2067_s15  ;;  %v160_v18 = vsel %vm159_vm0, %v155_v11, 0.0  ;;  %v1490_v20 = vpack.c.bf16 %v331_v8, %v327_v5  ;;  %v1522_v21 = vpack.c.bf16 %v333_v10, %v329_v9  ;;  %v332_v23 = vld [vmem:[#allocation10 + $0x1b0] sm:$0xff]  ;;  %v339_v27 = vld [vmem:[#allocation10 + $0x1e8] sm:$0xff]  ;;  %v341_v29 = vld [vmem:[#allocation10 + $0x1f8] sm:$0xff]  ;;  %v1492_v32 = vpack.c.bf16 %v330_v17, %v326_v16 }
  0xaa   :  { %1515 = vmatprep.subr.bf16.mxu1 %v1514_v55  ;;  %428 = vmatprep.mubr.f32.mxu0 %v2069_v13  ;;  %v167_v19 = vsel %vm159_vm0, %v156_v12, 0.0  ;;  %v161_v24 = vrot.slane %v160_v18, 4  ;;  %v1524_v33 = vpack.c.bf16 %v332_v23, %v328_v22  ;;  %v334_v34 = vld [vmem:[#allocation10 + $0x1c0] sm:$0xff]  ;;  %v1494_v37 = vpack.c.bf16 %v339_v27, %v335_v26  ;;  %v336_v40 = vld [vmem:[#allocation10 + $0x1d0] sm:$0xff]  ;;  %v511_v42 = vld [vmem:[#allocation11 + $0x8] sm:$0xff] }
  0xab   :  { %499 = vmatprep.mubr.f32.mxu1 %v2069_v13  ;;  %1485 = vmatpush1.bf16.msra.mxu0 %v1484_v62  ;;  %v168_v25 = vrot.slane %v167_v19, 4  ;;  %v1526_v38 = vpack.c.bf16 %v341_v29, %v337_v28  ;;  %v338_v39 = vld [vmem:[#allocation10 + $0x1e0] sm:$0xff]  ;;  %v340_v41 = vld [vmem:[#allocation10 + $0x1f0] sm:$0xff]  ;;  %v513_v43 = vld [vmem:[#allocation11 + $0x18] sm:$0xff]  ;;  %vm272_vm2 = vcmask 261120   ;;  %vm274_vm3 = vcmask 523264  }
  0xac   :  { %1517 = vmatpush1.bf16.msra.mxu1 %v1516_v63  ;;  %1487 = vmatprep.subr.bf16.mxu0 %v1486_v3  ;;  %v162_v30 = vadd.f32 %v161_v24, %v160_v18  ;;  %v1496_v46 = vpack.c.bf16 %v338_v39, %v334_v34  ;;  %v1528_v47 = vpack.c.bf16 %v340_v41, %v336_v40  ;;  %v510_v57 = vld [vmem:[#allocation11] sm:$0xff]  ;;  %v512_v58 = vld [vmem:[#allocation11 + $0x10] sm:$0xff]  ;;  %v515_v59 = vld [vmem:[#allocation11 + $0x28] sm:$0xff]  ;;  %vm276_vm4 = vcmask 785408  }
  0xad   :  { %1519 = vmatprep.subr.bf16.mxu1 %v1518_v4  ;;  %v169_v31 = vadd.f32 %v168_v25, %v167_v19  ;;  %v1530_v50 = vpack.c.bf16 %v513_v43, %v511_v42  ;;  %v517_v60 = vld [vmem:[#allocation11 + $0x38] sm:$0xff]  ;;  %v1532_v0 = vpack.c.bf16 %v512_v58, %v510_v57  ;;  %v514_v3 = vld [vmem:[#allocation11 + $0x20] sm:$0xff]  ;;  %v516_v4 = vld [vmem:[#allocation11 + $0x30] sm:$0xff] }
  0xae   :  { %v163_v35 = vrot.slane %v162_v30, 2  ;;  %v1534_v2 = vpack.c.bf16 %v517_v60, %v515_v59  ;;  %v519_v6 = vld [vmem:[#allocation11 + $0x48] sm:$0xff]  ;;  %v521_v7 = vld [vmem:[#allocation11 + $0x58] sm:$0xff]  ;;  %v1536_v8 = vpack.c.bf16 %v516_v4, %v514_v3  ;;  %v518_v10 = vld [vmem:[#allocation11 + $0x40] sm:$0xff] }
  0xaf   :  { %1489 = vmatpush1.bf16.msra.mxu0 %v1488_v14  ;;  %v170_v36 = vrot.slane %v169_v31, 2  ;;  %v1538_v9 = vpack.c.bf16 %v521_v7, %v519_v6  ;;  %v520_v11 = vld [vmem:[#allocation11 + $0x50] sm:$0xff]  ;;  %v523_v12 = vld [vmem:[#allocation11 + $0x68] sm:$0xff]  ;;  %v525_v14 = vld [vmem:[#allocation11 + $0x78] sm:$0xff] }
  0xb0   :  { %1521 = vmatpush1.bf16.msra.mxu1 %v1520_v15  ;;  %1491 = vmatprep.subr.bf16.mxu0 %v1490_v20  ;;  %v164_v44 = vadd.f32 %v163_v35, %v162_v30  ;;  %v1540_v15 = vpack.c.bf16 %v520_v11, %v518_v10  ;;  %v1542_v16 = vpack.c.bf16 %v525_v14, %v523_v12  ;;  %v522_v17 = vld [vmem:[#allocation11 + $0x60] sm:$0xff]  ;;  %v524_v18 = vld [vmem:[#allocation11 + $0x70] sm:$0xff]  ;;  %v527_v19 = vld [vmem:[#allocation11 + $0x88] sm:$0xff] }
  0xb1   :  { %1523 = vmatprep.subr.bf16.mxu1 %v1522_v21  ;;  %v171_v45 = vadd.f32 %v170_v36, %v169_v31  ;;  %v529_v20 = vld [vmem:[#allocation11 + $0x98] sm:$0xff]  ;;  %v1544_v21 = vpack.c.bf16 %v524_v18, %v522_v17  ;;  %v526_v23 = vld [vmem:[#allocation11 + $0x80] sm:$0xff]  ;;  %v528_v24 = vld [vmem:[#allocation11 + $0x90] sm:$0xff] }
  0xb2   :  { %v165_v48 = vrot.slane %v164_v44, 1  ;;  %v1546_v22 = vpack.c.bf16 %v529_v20, %v527_v19  ;;  %v531_v25 = vld [vmem:[#allocation11 + $0xa8] sm:$0xff]  ;;  %v533_v26 = vld [vmem:[#allocation11 + $0xb8] sm:$0xff]  ;;  %v1548_v27 = vpack.c.bf16 %v528_v24, %v526_v23  ;;  %v530_v29 = vld [vmem:[#allocation11 + $0xa0] sm:$0xff] }
  0xb3   :  { %1493 = vmatpush1.bf16.msra.mxu0 %v1492_v32  ;;  %v172_v49 = vrot.slane %v171_v45, 1  ;;  %v1550_v28 = vpack.c.bf16 %v533_v26, %v531_v25  ;;  %v532_v30 = vld [vmem:[#allocation11 + $0xb0] sm:$0xff]  ;;  %v535_v31 = vld [vmem:[#allocation11 + $0xc8] sm:$0xff]  ;;  %v537_v32 = vld [vmem:[#allocation11 + $0xd8] sm:$0xff] }
  0xb4   :  { %1525 = vmatpush1.bf16.msra.mxu1 %v1524_v33  ;;  %1495 = vmatprep.subr.bf16.mxu0 %v1494_v37  ;;  %v166_v51 = vadd.f32 %v165_v48, %v164_v44  ;;  %v1552_v33 = vpack.c.bf16 %v532_v30, %v530_v29  ;;  %v1554_v34 = vpack.c.bf16 %v537_v32, %v535_v31  ;;  %v534_v35 = vld [vmem:[#allocation11 + $0xc0] sm:$0xff]  ;;  %v536_v36 = vld [vmem:[#allocation11 + $0xd0] sm:$0xff]  ;;  %v539_v37 = vld [vmem:[#allocation11 + $0xe8] sm:$0xff] }
  0xb5   :  { %1527 = vmatprep.subr.bf16.mxu1 %v1526_v38  ;;  %v173_v52 = vadd.f32 %v172_v49, %v171_v45  ;;  %v541_v38 = vld [vmem:[#allocation11 + $0xf8] sm:$0xff]  ;;  %v1556_v39 = vpack.c.bf16 %v536_v36, %v534_v35  ;;  %v538_v41 = vld [vmem:[#allocation11 + $0xe0] sm:$0xff]  ;;  %v540_v42 = vld [vmem:[#allocation11 + $0xf0] sm:$0xff] }
  0xb6   :  { %v175_v53 = vmul.f32 0.14285715, %v166_v51  ;;  %v1558_v40 = vpack.c.bf16 %v541_v38, %v539_v37  ;;  %v543_v43 = vld [vmem:[#allocation11 + $0x108] sm:$0xff]  ;;  %v545_v44 = vld [vmem:[#allocation11 + $0x118] sm:$0xff]  ;;  %v1560_v45 = vpack.c.bf16 %v540_v42, %v538_v41  ;;  %v544_v48 = vld [vmem:[#allocation11 + $0x110] sm:$0xff] }
  0xb7   :  { %1497 = vmatpush1.bf16.msra.mxu0 %v1496_v46  ;;  %v176_v54 = vmul.f32 0.14285715, %v173_v52  ;;  %v1562_v46 = vpack.c.bf16 %v545_v44, %v543_v43  ;;  %v547_v49 = vld [vmem:[#allocation11 + $0x128] sm:$0xff]  ;;  %v550_v59 = vld [vmem:[#allocation11 + $0x140] sm:$0xff]  ;;  %v552_v60 = vld [vmem:[#allocation11 + $0x150] sm:$0xff] }
  0xb8   :  { %1529 = vmatpush1.bf16.msra.mxu1 %v1528_v47  ;;  %1531 = vmatprep.subr.bf16.mxu0 %v1530_v50  ;;  %v542_v47 = vld [vmem:[#allocation11 + $0x100] sm:$0xff]  ;;  %v549_v50 = vld [vmem:[#allocation11 + $0x138] sm:$0xff]  ;;  %v559_v3 = vld [vmem:[#allocation11 + $0x188] sm:$0xff] }
  0xb9   :  { %v252_v55 = vsel %vm251_vm1, %v176_v54, %v175_v53  ;;  %v1564_v51 = vpack.c.bf16 %v544_v48, %v542_v47  ;;  %v1566_v52 = vpack.c.bf16 %v549_v50, %v547_v49  ;;  %v546_v53 = vld [vmem:[#allocation11 + $0x120] sm:$0xff]  ;;  %v548_v54 = vld [vmem:[#allocation11 + $0x130] sm:$0xff]  ;;  %v561_v4 = vld [vmem:[#allocation11 + $0x198] sm:$0xff] }
  0xba   :  { %v1568_v57 = vpack.c.bf16 %v548_v54, %v546_v53  ;;  %v1578_v6 = vpack.c.bf16 %v561_v4, %v559_v3  ;;  %v558_v7 = vld [vmem:[#allocation11 + $0x180] sm:$0xff]  ;;  %v565_v10 = vld [vmem:[#allocation11 + $0x1b8] sm:$0xff]  ;;  %v571_v23 = vld [vmem:[#allocation11 + $0x1e8] sm:$0xff] }
  0xbb   :  { %v562_v14 = vld [vmem:[#allocation11 + $0x1a0] sm:$0xff]  ;;  %v569_v17 = vld [vmem:[#allocation11 + $0x1d8] sm:$0xff]  ;;  %v575_v29 = vld [vmem:[#allocation11 + $0x208] sm:$0xff] }
  0xbc   :  { %v566_v20 = vld [vmem:[#allocation11 + $0x1c0] sm:$0xff]  ;;  %v573_v24 = vld [vmem:[#allocation11 + $0x1f8] sm:$0xff]  ;;  %v795_v36 = vld [vmem:[#allocation13 + $0x8] sm:$0xff] }
  0xbd   :  { %v1590_v25 = vpack.c.bf16 %v573_v24, %v571_v23  ;;  %v570_v26 = vld [vmem:[#allocation11 + $0x1e0] sm:$0xff]  ;;  %v577_v30 = vld [vmem:[#allocation11 + $0x218] sm:$0xff]  ;;  %v812_v37 = vld [vmem:[#allocation13 + $0x90] sm:$0xff] }
  0xbe   :  { %v1594_v31 = vpack.c.bf16 %v577_v30, %v575_v29  ;;  %v810_v32 = vld [vmem:[#allocation13 + $0x80] sm:$0xff]  ;;  %v813_v38 = vld [vmem:[#allocation13 + $0x98] sm:$0xff]  ;;  %v796_v41 = vld [vmem:[#allocation13 + $0x10] sm:$0xff] }
  0xbf   :  { %v797_v42 = vld [vmem:[#allocation13 + $0x18] sm:$0xff]  ;;  %v814_v43 = vld [vmem:[#allocation13 + $0xa0] sm:$0xff]  ;;  %v815_v44 = vld [vmem:[#allocation13 + $0xa8] sm:$0xff] }
  0xc0   :  { %v798_v47 = vld [vmem:[#allocation13 + $0x20] sm:$0xff]  ;;  %v799_v48 = vld [vmem:[#allocation13 + $0x28] sm:$0xff]  ;;  %v816_v49 = vld [vmem:[#allocation13 + $0xb0] sm:$0xff] }
  0xc1   :  { %v817_v50 = vld [vmem:[#allocation13 + $0xb8] sm:$0xff]  ;;  %v800_v53 = vld [vmem:[#allocation13 + $0x30] sm:$0xff]  ;;  %v822_v3 = vld [vmem:[#allocation13 + $0xe0] sm:$0xff] }
  0xc2   :  { %v801_v54 = vld [vmem:[#allocation13 + $0x38] sm:$0xff]  ;;  %v823_v4 = vld [vmem:[#allocation13 + $0xe8] sm:$0xff]  ;;  %v576_v23 = vld [vmem:[#allocation11 + $0x210] sm:$0xff] }
 0x117   :  { %v258_v56 = vpop.permute.xlu0 %257 }
 0x118   :  { %v273_v62 = vsel %vm272_vm2, %v252_v55, %v258_v56  ;;  %v551_v55 = vld [vmem:[#allocation11 + $0x148] sm:$0xff]  ;;  %v553_v56 = vld [vmem:[#allocation11 + $0x158] sm:$0xff] }
 0x119   :  { %v1570_v58 = vpack.c.bf16 %v553_v56, %v551_v55  ;;  %v818_v55 = vld [vmem:[#allocation13 + $0xc0] sm:$0xff]  ;;  %v819_v56 = vld [vmem:[#allocation13 + $0xc8] sm:$0xff] }
 0x11a   :  { %v270_v61 = vpop.permute.xlu1 %269 }
 0x11b   :  { %v264_v63 = vpop.permute.xlu0 %263 }
 0x11c   :  { %v275_v1 = vsel %vm274_vm3, %v273_v62, %v264_v63  ;;  %v557_v62 = vld [vmem:[#allocation11 + $0x178] sm:$0xff]  ;;  %v1572_v63 = vpack.c.bf16 %v552_v60, %v550_v59  ;;  %v802_v59 = vld [vmem:[#allocation13 + $0x40] sm:$0xff]  ;;  %v803_v60 = vld [vmem:[#allocation13 + $0x48] sm:$0xff] }
 0x11d   :  { %v277_v5 = vsel %vm276_vm4, %v275_v1, %v270_v61  ;;  %v555_v61 = vld [vmem:[#allocation11 + $0x168] sm:$0xff]  ;;  %v554_v1 = vld [vmem:[#allocation11 + $0x160] sm:$0xff] }
 0x11e   :  { %429 = vmatmul.mubr.f32.vlgmr.msra.gmra.mrb[0].mxu0 %v277_v5  ;;  %500 = vmatmul.mubr.f32.vlgmr.msra.gmra.mrb[0].mxu1 %v277_v5 }
 0x11f   :  { %1533 = vmatpush1.bf16.msra.mxu0 %v1532_v0  ;;  %v1574_v0 = vpack.c.bf16 %v557_v62, %v555_v61  ;;  %v820_v61 = vld [vmem:[#allocation13 + $0xd0] sm:$0xff]  ;;  %v821_v62 = vld [vmem:[#allocation13 + $0xd8] sm:$0xff] }
 0x120   :  { %1535 = vmatprep.subr.bf16.mxu0 %v1534_v2  ;;  %v556_v2 = vld [vmem:[#allocation11 + $0x170] sm:$0xff] }
 0x121   :  { %v1576_v5 = vpack.c.bf16 %v556_v2, %v554_v1  ;;  %v804_v1 = vld [vmem:[#allocation13 + $0x50] sm:$0xff]  ;;  %v805_v2 = vld [vmem:[#allocation13 + $0x58] sm:$0xff] }
 0x123   :  { %1537 = vmatpush1.bf16.msra.mxu0 %v1536_v8  ;;  %v560_v8 = vld [vmem:[#allocation11 + $0x190] sm:$0xff] }
 0x124   :  { %1539 = vmatprep.subr.bf16.mxu0 %v1538_v9  ;;  %v563_v9 = vld [vmem:[#allocation11 + $0x1a8] sm:$0xff]  ;;  %v1580_v11 = vpack.c.bf16 %v560_v8, %v558_v7  ;;  %v344_v7 = vlaneseq }
 0x125   :  { %v1582_v12 = vpack.c.bf16 %v565_v10, %v563_v9  ;;  %v2288_v10 = vld [vmem:[%s2357_s5] sm:$0xf] }
 0x126   :  { %v2280_v8 = vshrl.u32 %v344_v7, 7  ;;  %v607_v7 = vld [vmem:[#allocation11 + $0x308] sm:$0xff] }
 0x127   :  { %1541 = vmatpush1.bf16.msra.mxu0 %v1540_v15  ;;  %v564_v15 = vld [vmem:[#allocation11 + $0x1b0] sm:$0xff] }
 0x128   :  { %1543 = vmatprep.subr.bf16.mxu0 %v1542_v16  ;;  %v567_v16 = vld [vmem:[#allocation11 + $0x1c8] sm:$0xff]  ;;  %v1584_v18 = vpack.c.bf16 %v564_v15, %v562_v14  ;;  %v2283_v9 = vsub.s32 0, %v2280_v8 }
 0x129   :  { %v1586_v19 = vpack.c.bf16 %v569_v17, %v567_v16 }
 0x12a   :  { %v347_v14 = vrot.slane %v2288_v10, %v2283_v9 }
 0x12b   :  { %1545 = vmatpush1.bf16.msra.mxu0 %v1544_v21  ;;  %v568_v21 = vld [vmem:[#allocation11 + $0x1d0] sm:$0xff] }
 0x12c   :  { %1547 = vmatprep.subr.bf16.mxu0 %v1546_v22  ;;  %v1588_v22 = vpack.c.bf16 %v568_v21, %v566_v20 }
 0x12f   :  { %1549 = vmatpush1.bf16.msra.mxu0 %v1548_v27  ;;  %v572_v27 = vld [vmem:[#allocation11 + $0x1f0] sm:$0xff] }
 0x130   :  { %1551 = vmatprep.subr.bf16.mxu0 %v1550_v28  ;;  %v1592_v28 = vpack.c.bf16 %v572_v27, %v570_v26  ;;  %v579_v26 = vld [vmem:[#allocation11 + $0x228] sm:$0xff]  ;;  %v581_v27 = vld [vmem:[#allocation11 + $0x238] sm:$0xff] }
 0x133   :  { %1553 = vmatpush1.bf16.msra.mxu0 %v1552_v33  ;;  %v811_v33 = vld [vmem:[#allocation13 + $0x88] sm:$0xff] }
 0x134   :  { %1555 = vmatprep.subr.bf16.mxu0 %v1554_v34  ;;  %v794_v34 = vld [vmem:[#allocation13] sm:$0xff]  ;;  %v1658_v35 = vpack.c.bf16 %v811_v33, %v810_v32  ;;  %v580_v33 = vld [vmem:[#allocation11 + $0x230] sm:$0xff] }
 0x135   :  { %v578_v32 = vld [vmem:[#allocation11 + $0x220] sm:$0xff] }
 0x136   :  { %1659 = vmatprep.subr.bf16.mxu1 %v1658_v35  ;;  %v583_v35 = vld [vmem:[#allocation11 + $0x248] sm:$0xff] }
 0x137   :  { %1557 = vmatpush1.bf16.msra.mxu0 %v1556_v39  ;;  %v1660_v39 = vpack.c.bf16 %v795_v36, %v794_v34  ;;  %v585_v36 = vld [vmem:[#allocation11 + $0x258] sm:$0xff] }
 0x138   :  { %1559 = vmatprep.subr.bf16.mxu0 %v1558_v40  ;;  %v1662_v40 = vpack.c.bf16 %v813_v38, %v812_v37  ;;  %v1600_v37 = vpack.c.bf16 %v580_v33, %v578_v32  ;;  %v1602_v38 = vpack.c.bf16 %v585_v36, %v583_v35  ;;  %v619_v32 = vld [vmem:[#allocation11 + $0x368] sm:$0xff]  ;;  %v621_v33 = vld [vmem:[#allocation11 + $0x378] sm:$0xff]  ;;  %v618_v36 = vld [vmem:[#allocation11 + $0x360] sm:$0xff] }
 0x139   :  { %1661 = vmatpush3.bf16.msra.mxu1 %v1660_v39  ;;  %v582_v39 = vld [vmem:[#allocation11 + $0x240] sm:$0xff]  ;;  %v1638_v35 = vpack.c.bf16 %v621_v33, %v619_v32  ;;  %v942_v32 = vld [vmem:[#allocation14 + $0x138] sm:$0xff] }
 0x13a   :  { %1663 = vmatprep.subr.bf16.mxu1 %v1662_v40  ;;  %v584_v40 = vld [vmem:[#allocation11 + $0x250] sm:$0xff]  ;;  %v950_v33 = vld [vmem:[#allocation14 + $0x178] sm:$0xff] }
 0x13b   :  { %1561 = vmatpush1.bf16.msra.mxu0 %v1560_v45  ;;  %v1664_v45 = vpack.c.bf16 %v797_v42, %v796_v41  ;;  %v587_v41 = vld [vmem:[#allocation11 + $0x268] sm:$0xff]  ;;  %v589_v42 = vld [vmem:[#allocation11 + $0x278] sm:$0xff] }
 0x13c   :  { %1563 = vmatprep.subr.bf16.mxu0 %v1562_v46  ;;  %v1666_v46 = vpack.c.bf16 %v815_v44, %v814_v43  ;;  %v1604_v43 = vpack.c.bf16 %v584_v40, %v582_v39  ;;  %v1606_v44 = vpack.c.bf16 %v589_v42, %v587_v41  ;;  %v625_v39 = vld [vmem:[#allocation11 + $0x398] sm:$0xff]  ;;  %v622_v42 = vld [vmem:[#allocation11 + $0x380] sm:$0xff] }
 0x13d   :  { %1665 = vmatpush3.bf16.msra.mxu1 %v1664_v45  ;;  %v586_v45 = vld [vmem:[#allocation11 + $0x260] sm:$0xff] }
 0x13e   :  { %1667 = vmatprep.subr.bf16.mxu1 %v1666_v46  ;;  %v588_v46 = vld [vmem:[#allocation11 + $0x270] sm:$0xff] }
 0x13f   :  { %1565 = vmatpush1.bf16.msra.mxu0 %v1564_v51  ;;  %v1668_v51 = vpack.c.bf16 %v799_v48, %v798_v47  ;;  %v591_v47 = vld [vmem:[#allocation11 + $0x288] sm:$0xff]  ;;  %v593_v48 = vld [vmem:[#allocation11 + $0x298] sm:$0xff] }
 0x140   :  { %1567 = vmatprep.subr.bf16.mxu0 %v1566_v52  ;;  %v1670_v52 = vpack.c.bf16 %v817_v50, %v816_v49  ;;  %v1608_v49 = vpack.c.bf16 %v588_v46, %v586_v45  ;;  %v1610_v50 = vpack.c.bf16 %v593_v48, %v591_v47  ;;  %v629_v45 = vld [vmem:[#allocation11 + $0x3b8] sm:$0xff]  ;;  %v626_v48 = vld [vmem:[#allocation11 + $0x3a0] sm:$0xff] }
 0x141   :  { %1669 = vmatpush3.bf16.msra.mxu1 %v1668_v51  ;;  %v590_v51 = vld [vmem:[#allocation11 + $0x280] sm:$0xff] }
 0x142   :  { %1671 = vmatprep.subr.bf16.mxu1 %v1670_v52  ;;  %v592_v52 = vld [vmem:[#allocation11 + $0x290] sm:$0xff] }
 0x143   :  { %1569 = vmatpush1.bf16.msra.mxu0 %v1568_v57  ;;  %v1672_v57 = vpack.c.bf16 %v801_v54, %v800_v53  ;;  %v595_v53 = vld [vmem:[#allocation11 + $0x2a8] sm:$0xff]  ;;  %v597_v54 = vld [vmem:[#allocation11 + $0x2b8] sm:$0xff] }
 0x144   :  { %1571 = vmatprep.subr.bf16.mxu0 %v1570_v58  ;;  %v1674_v58 = vpack.c.bf16 %v819_v56, %v818_v55  ;;  %v1612_v55 = vpack.c.bf16 %v592_v52, %v590_v51  ;;  %v1614_v56 = vpack.c.bf16 %v597_v54, %v595_v53  ;;  %v633_v51 = vld [vmem:[#allocation11 + $0x3d8] sm:$0xff]  ;;  %v354_v53 = vsub.s32 2, %v2280_v8 }
 0x145   :  { %1673 = vmatpush3.bf16.msra.mxu1 %v1672_v57  ;;  %v594_v57 = vld [vmem:[#allocation11 + $0x2a0] sm:$0xff] }
 0x146   :  { %1675 = vmatprep.subr.bf16.mxu1 %v1674_v58  ;;  %v596_v58 = vld [vmem:[#allocation11 + $0x2b0] sm:$0xff] }
 0x147   :  { %1573 = vmatpush1.bf16.msra.mxu0 %v1572_v63  ;;  %v1676_v63 = vpack.c.bf16 %v803_v60, %v802_v59  ;;  %v599_v59 = vld [vmem:[#allocation11 + $0x2c8] sm:$0xff]  ;;  %v601_v60 = vld [vmem:[#allocation11 + $0x2d8] sm:$0xff] }
 0x148   :  { %1575 = vmatprep.subr.bf16.mxu0 %v1574_v0  ;;  %v1678_v0 = vpack.c.bf16 %v821_v62, %v820_v61  ;;  %v1616_v61 = vpack.c.bf16 %v596_v58, %v594_v57  ;;  %v1618_v62 = vpack.c.bf16 %v601_v60, %v599_v59  ;;  %v635_v57 = vld [vmem:[#allocation11 + $0x3e8] sm:$0xff]  ;;  %v637_v58 = vld [vmem:[#allocation11 + $0x3f8] sm:$0xff]  ;;  %v355_v60 = vrot.slane %v2288_v10, %v354_v53 }
 0x149   :  { %1677 = vmatpush3.bf16.msra.mxu1 %v1676_v63  ;;  %v598_v63 = vld [vmem:[#allocation11 + $0x2c0] sm:$0xff] }
 0x14a   :  { %1679 = vmatprep.subr.bf16.mxu1 %v1678_v0  ;;  %v600_v0 = vld [vmem:[#allocation11 + $0x2d0] sm:$0xff] }
 0x14b   :  { %1577 = vmatpush1.bf16.msra.mxu0 %v1576_v5  ;;  %v1680_v5 = vpack.c.bf16 %v805_v2, %v804_v1  ;;  %v603_v1 = vld [vmem:[#allocation11 + $0x2e8] sm:$0xff]  ;;  %v605_v2 = vld [vmem:[#allocation11 + $0x2f8] sm:$0xff] }
 0x14c   :  { %1579 = vmatprep.subr.bf16.mxu0 %v1578_v6  ;;  %v1682_v6 = vpack.c.bf16 %v823_v4, %v822_v3  ;;  %v1620_v3 = vpack.c.bf16 %v600_v0, %v598_v63  ;;  %v1622_v4 = vpack.c.bf16 %v605_v2, %v603_v1  ;;  %v636_v63 = vld [vmem:[#allocation11 + $0x3f0] sm:$0xff] }
 0x14d   :  { %1681 = vmatpush3.bf16.msra.mxu1 %v1680_v5  ;;  %v602_v5 = vld [vmem:[#allocation11 + $0x2e0] sm:$0xff] }
 0x14e   :  { %1683 = vmatprep.subr.bf16.mxu1 %v1682_v6  ;;  %v604_v6 = vld [vmem:[#allocation11 + $0x2f0] sm:$0xff] }
 0x14f   :  { %1581 = vmatpush1.bf16.msra.mxu0 %v1580_v11  ;;  %v2291_v11 = vsub.s32 1, %v2280_v8 }
 0x150   :  { %1583 = vmatprep.subr.bf16.mxu0 %v1582_v12  ;;  %v358_v12 = vsub.s32 3, %v2280_v8 }
 0x151   :  { %v351_v15 = vrot.slane %v2288_v10, %v2291_v11 }
 0x152   :  { %v359_v16 = vrot.slane %v2288_v10, %v358_v12  ;;  %v825_v10 = vld [vmem:[#allocation13 + $0xf8] sm:$0xff] }
 0x153   :  { %1585 = vmatpush1.bf16.msra.mxu0 %v1584_v18 }
 0x154   :  { %1587 = vmatprep.subr.bf16.mxu0 %v1586_v19 }
 0x157   :  { %1589 = vmatpush1.bf16.msra.mxu0 %v1588_v22  ;;  %v574_v22 = vld [vmem:[#allocation11 + $0x200] sm:$0xff] }
 0x158   :  { %1591 = vmatprep.subr.bf16.mxu0 %v1590_v25  ;;  %v1596_v29 = vpack.c.bf16 %v576_v23, %v574_v22 }
 0x15b   :  { %1593 = vmatpush1.bf16.msra.mxu0 %v1592_v28 }
 0x15c   :  { %1595 = vmatprep.subr.bf16.mxu0 %v1594_v31  ;;  %v1598_v31 = vpack.c.bf16 %v581_v27, %v579_v26  ;;  %v615_v26 = vld [vmem:[#allocation11 + $0x348] sm:$0xff]  ;;  %v617_v27 = vld [vmem:[#allocation11 + $0x358] sm:$0xff] }
 0x1f1   :  { %v430_v17 = vpop.f32.mrb[0].mxu0  ;;  %v2301_v18 = vpop.f32.mrb[0].mxu1 }
 0x1f2   :  { %v431_v19 = vadd.f32 %v430_v17, %v347_v14  ;;  %v432_v20 = vpop.f32.mrb[1].mxu0  ;;  %v503_v21 = vpop.f32.mrb[1].mxu1  ;;  %v609_v14 = vld [vmem:[#allocation11 + $0x318] sm:$0xff]  ;;  %v606_v17 = vld [vmem:[#allocation11 + $0x300] sm:$0xff]  ;;  %v502_v1 = vadd.f32 %v2301_v18, %v355_v60  ;;  %v912_v18 = vld [vmem:[#allocation14 + $0x48] sm:$0xff] }
 0x1f3   :  { %v433_v24 = vadd.f32 %v432_v20, %v351_v15  ;;  %v504_v25 = vadd.f32 %v503_v21, %v359_v16  ;;  %v1624_v15 = vpack.c.bf16 %v604_v6, %v602_v5  ;;  %v1626_v16 = vpack.c.bf16 %v609_v14, %v607_v7  ;;  %v611_v20 = vld [vmem:[#allocation11 + $0x328] sm:$0xff]  ;;  %v613_v21 = vld [vmem:[#allocation11 + $0x338] sm:$0xff]  ;;  %v824_v6 = vld [vmem:[#allocation13 + $0xf0] sm:$0xff] }
 0x1f4   :  { %v506_v30 = vmax.f32 %v431_v19, 0.0  ;;  %v608_v19 = vld [vmem:[#allocation11 + $0x310] sm:$0xff]  ;;  %v1630_v23 = vpack.c.bf16 %v613_v21, %v611_v20  ;;  %v508_v2 = vmax.f32 %v502_v1, 0.0  ;;  %v1686_v7 = vpack.c.bf16 %v825_v10, %v824_v6  ;;  %v910_v20 = vld [vmem:[#allocation14 + $0x38] sm:$0xff]  ;;  %v911_v6 = vld [vmem:[#allocation14 + $0x40] sm:$0xff] }
 0x1f5   :  { %v507_v28 = vmax.f32 %v433_v24, 0.0  ;;  %v509_v34 = vmax.f32 %v504_v25, 0.0  ;;  %v1628_v22 = vpack.c.bf16 %v608_v19, %v606_v17  ;;  %v610_v24 = vld [vmem:[#allocation11 + $0x320] sm:$0xff]  ;;  %v612_v25 = vld [vmem:[#allocation11 + $0x330] sm:$0xff]  ;;  %v904_v17 = vld [vmem:[#allocation14 + $0x8] sm:$0xff] }
 0x1f6   :  { %v808_v14 = vld [vmem:[#allocation13 + $0x70] sm:$0xff]  ;;  %v1690_v19 = vpack.c.bf16 %v912_v18, %v904_v17  ;;  %v918_v21 = vld [vmem:[#allocation14 + $0x78] sm:$0xff] }
 0x1f7   :  { %714 = vmatprep.mubr.f32.mxu0 %v507_v28  ;;  %v1632_v28 = vpack.c.bf16 %v612_v25, %v610_v24  ;;  %v917_v24 = vld [vmem:[#allocation14 + $0x70] sm:$0xff] }
 0x1f8   :  { %715 = vmatmul.mubr.f32.vlgmr.msra.gmra.mrb[2].mxu0 %v506_v30  ;;  %v614_v30 = vld [vmem:[#allocation11 + $0x340] sm:$0xff] }
 0x1f9   :  { %1597 = vmatpush1.bf16.msra.mxu0 %v1596_v29  ;;  %785 = vmatprep.mubr.f32.mxu0 %v509_v34  ;;  %v1634_v29 = vpack.c.bf16 %v617_v27, %v615_v26  ;;  %v926_v26 = vld [vmem:[#allocation14 + $0xb8] sm:$0xff] }
 0x1fa   :  { %1599 = vmatprep.subr.bf16.mxu0 %v1598_v31  ;;  %v616_v31 = vld [vmem:[#allocation11 + $0x350] sm:$0xff]  ;;  %v934_v27 = vld [vmem:[#allocation14 + $0xf8] sm:$0xff] }
 0x1fb   :  { %v1636_v34 = vpack.c.bf16 %v616_v31, %v614_v30  ;;  %v933_v30 = vld [vmem:[#allocation14 + $0xf0] sm:$0xff] }
 0x1fd   :  { %1601 = vmatpush1.bf16.msra.mxu0 %v1600_v37  ;;  %v620_v37 = vld [vmem:[#allocation11 + $0x370] sm:$0xff] }
 0x1fe   :  { %1603 = vmatprep.subr.bf16.mxu0 %v1602_v38  ;;  %v623_v38 = vld [vmem:[#allocation11 + $0x388] sm:$0xff]  ;;  %v1640_v40 = vpack.c.bf16 %v620_v37, %v618_v36  ;;  %v949_v36 = vld [vmem:[#allocation14 + $0x170] sm:$0xff] }
 0x1ff   :  { %v1642_v41 = vpack.c.bf16 %v625_v39, %v623_v38  ;;  %v958_v38 = vld [vmem:[#allocation14 + $0x1b8] sm:$0xff] }
 0x200   :  { %v966_v39 = vld [vmem:[#allocation14 + $0x1f8] sm:$0xff] }
 0x201   :  { %1605 = vmatpush1.bf16.msra.mxu0 %v1604_v43  ;;  %v624_v43 = vld [vmem:[#allocation11 + $0x390] sm:$0xff] }
 0x202   :  { %1607 = vmatprep.subr.bf16.mxu0 %v1606_v44  ;;  %v627_v44 = vld [vmem:[#allocation11 + $0x3a8] sm:$0xff]  ;;  %v1644_v46 = vpack.c.bf16 %v624_v43, %v622_v42  ;;  %v965_v42 = vld [vmem:[#allocation14 + $0x1f0] sm:$0xff] }
 0x203   :  { %v1646_v47 = vpack.c.bf16 %v629_v45, %v627_v44  ;;  %v974_v44 = vld [vmem:[#allocation14 + $0x238] sm:$0xff] }
 0x204   :  { %v982_v45 = vld [vmem:[#allocation14 + $0x278] sm:$0xff] }
 0x205   :  { %1609 = vmatpush1.bf16.msra.mxu0 %v1608_v49  ;;  %v628_v49 = vld [vmem:[#allocation11 + $0x3b0] sm:$0xff] }
 0x206   :  { %1611 = vmatprep.subr.bf16.mxu0 %v1610_v50  ;;  %v631_v50 = vld [vmem:[#allocation11 + $0x3c8] sm:$0xff]  ;;  %v1648_v52 = vpack.c.bf16 %v628_v49, %v626_v48  ;;  %v981_v48 = vld [vmem:[#allocation14 + $0x270] sm:$0xff] }
 0x207   :  { %v1650_v54 = vpack.c.bf16 %v633_v51, %v631_v50  ;;  %v990_v50 = vld [vmem:[#allocation14 + $0x2b8] sm:$0xff] }
 0x208   :  { %v998_v51 = vld [vmem:[#allocation14 + $0x2f8] sm:$0xff] }
 0x209   :  { %1613 = vmatpush1.bf16.msra.mxu0 %v1612_v55  ;;  %v630_v55 = vld [vmem:[#allocation11 + $0x3c0] sm:$0xff] }
 0x20a   :  { %1615 = vmatprep.subr.bf16.mxu0 %v1614_v56  ;;  %v632_v56 = vld [vmem:[#allocation11 + $0x3d0] sm:$0xff] }
 0x20b   :  { %v1652_v59 = vpack.c.bf16 %v632_v56, %v630_v55  ;;  %v997_v55 = vld [vmem:[#allocation14 + $0x2f0] sm:$0xff] }
 0x20d   :  { %1617 = vmatpush1.bf16.msra.mxu0 %v1616_v61  ;;  %v1654_v61 = vpack.c.bf16 %v637_v58, %v635_v57  ;;  %v1006_v57 = vld [vmem:[#allocation14 + $0x338] sm:$0xff] }
 0x20e   :  { %1619 = vmatprep.subr.bf16.mxu0 %v1618_v62  ;;  %v634_v62 = vld [vmem:[#allocation11 + $0x3e0] sm:$0xff]  ;;  %v1014_v58 = vld [vmem:[#allocation14 + $0x378] sm:$0xff] }
 0x20f   :  { %v1656_v0 = vpack.c.bf16 %v636_v63, %v634_v62  ;;  %v1810_v60 = vpack.c.bf16 %v1014_v58, %v1006_v57  ;;  %v638_v63 = vld [vmem:[%s2359_s7] sm:$0x3]  ;;  %v1022_v58 = vld [vmem:[#allocation14 + $0x3b8] sm:$0xff] }
 0x210   :  { %v647_v1 = vrot.slane %v638_v63, %v2291_v11  ;;  %v1023_v57 = vld [vmem:[#allocation14 + $0x3c0] sm:$0xff] }
 0x211   :  { %1621 = vmatpush1.bf16.msra.mxu0 %v1620_v3  ;;  %v806_v3 = vld [vmem:[#allocation13 + $0x60] sm:$0xff] }
 0x212   :  { %1623 = vmatprep.subr.bf16.mxu0 %v1622_v4  ;;  %v807_v4 = vld [vmem:[#allocation13 + $0x68] sm:$0xff] }
 0x213   :  { %v1684_v5 = vpack.c.bf16 %v807_v4, %v806_v3 }
 0x215   :  { %1625 = vmatpush1.bf16.msra.mxu0 %v1624_v15  ;;  %1685 = vmatpush3.bf16.msra.mxu1 %v1684_v5  ;;  %v809_v15 = vld [vmem:[#allocation13 + $0x78] sm:$0xff]  ;;  %v903_v5 = vld [vmem:[#allocation14] sm:$0xff] }
 0x216   :  { %1627 = vmatprep.subr.bf16.mxu0 %v1626_v16  ;;  %v1688_v16 = vpack.c.bf16 %v809_v15, %v808_v14  ;;  %1687 = vmatprep.subr.bf16.mxu1 %v1686_v7  ;;  %v920_v7 = vld [vmem:[#allocation14 + $0x88] sm:$0xff] }
 0x217   :  { %v928_v14 = vld [vmem:[#allocation14 + $0xc8] sm:$0xff] }
 0x218   :  { %v1694_v18 = vpack.c.bf16 %v928_v14, %v920_v7  ;;  %v922_v14 = vld [vmem:[#allocation14 + $0x98] sm:$0xff] }
 0x219   :  { %1629 = vmatpush1.bf16.msra.mxu0 %v1628_v22  ;;  %1689 = vmatpush3.bf16.msra.mxu1 %v1688_v16  ;;  %v1786_v22 = vpack.c.bf16 %v918_v21, %v910_v20  ;;  %v1692_v16 = vpack.c.bf16 %v911_v6, %v903_v5  ;;  %v927_v20 = vld [vmem:[#allocation14 + $0xc0] sm:$0xff]  ;;  %v936_v21 = vld [vmem:[#allocation14 + $0x108] sm:$0xff]  ;;  %v905_v5 = vld [vmem:[#allocation14 + $0x10] sm:$0xff] }
 0x21a   :  { %1631 = vmatprep.subr.bf16.mxu0 %v1630_v23  ;;  %v909_v23 = vld [vmem:[#allocation14 + $0x30] sm:$0xff]  ;;  %1691 = vmatprep.subr.bf16.mxu1 %v1690_v19  ;;  %v919_v19 = vld [vmem:[#allocation14 + $0x80] sm:$0xff] }
 0x21b   :  { %v1788_v25 = vpack.c.bf16 %v917_v24, %v909_v23  ;;  %v1696_v23 = vpack.c.bf16 %v927_v20, %v919_v19  ;;  %v913_v6 = vld [vmem:[#allocation14 + $0x50] sm:$0xff] }
 0x21c   :  { %v921_v20 = vld [vmem:[#allocation14 + $0x90] sm:$0xff] }
 0x21d   :  { %1633 = vmatpush1.bf16.msra.mxu0 %v1632_v28  ;;  %v925_v28 = vld [vmem:[#allocation14 + $0xb0] sm:$0xff] }
 0x21e   :  { %1635 = vmatprep.subr.bf16.mxu0 %v1634_v29  ;;  %v1790_v29 = vpack.c.bf16 %v934_v27, %v926_v26  ;;  %v1792_v31 = vpack.c.bf16 %v933_v30, %v925_v28  ;;  %v943_v26 = vld [vmem:[#allocation14 + $0x140] sm:$0xff]  ;;  %v952_v27 = vld [vmem:[#allocation14 + $0x188] sm:$0xff] }
 0x21f   :  { %v960_v28 = vld [vmem:[#allocation14 + $0x1c8] sm:$0xff] }
 0x220   :  { %v1702_v30 = vpack.c.bf16 %v960_v28, %v952_v27  ;;  %v945_v27 = vld [vmem:[#allocation14 + $0x150] sm:$0xff]  ;;  %v954_v28 = vld [vmem:[#allocation14 + $0x198] sm:$0xff] }
 0x221   :  { %1637 = vmatpush1.bf16.msra.mxu0 %v1636_v34  ;;  %v941_v34 = vld [vmem:[#allocation14 + $0x130] sm:$0xff] }
 0x222   :  { %1639 = vmatprep.subr.bf16.mxu0 %v1638_v35  ;;  %v1794_v35 = vpack.c.bf16 %v950_v33, %v942_v32  ;;  %v1796_v37 = vpack.c.bf16 %v949_v36, %v941_v34  ;;  %v959_v32 = vld [vmem:[#allocation14 + $0x1c0] sm:$0xff]  ;;  %v968_v33 = vld [vmem:[#allocation14 + $0x208] sm:$0xff] }
 0x223   :  { %v976_v34 = vld [vmem:[#allocation14 + $0x248] sm:$0xff] }
 0x224   :  { %v1706_v36 = vpack.c.bf16 %v976_v34, %v968_v33  ;;  %v961_v33 = vld [vmem:[#allocation14 + $0x1d0] sm:$0xff]  ;;  %v970_v34 = vld [vmem:[#allocation14 + $0x218] sm:$0xff] }
 0x225   :  { %1641 = vmatpush1.bf16.msra.mxu0 %v1640_v40  ;;  %v957_v40 = vld [vmem:[#allocation14 + $0x1b0] sm:$0xff] }
 0x226   :  { %1643 = vmatprep.subr.bf16.mxu0 %v1642_v41  ;;  %v1798_v41 = vpack.c.bf16 %v966_v39, %v958_v38  ;;  %v1800_v43 = vpack.c.bf16 %v965_v42, %v957_v40  ;;  %v975_v38 = vld [vmem:[#allocation14 + $0x240] sm:$0xff]  ;;  %v984_v39 = vld [vmem:[#allocation14 + $0x288] sm:$0xff] }
 0x227   :  { %v992_v40 = vld [vmem:[#allocation14 + $0x2c8] sm:$0xff] }
 0x228   :  { %v1710_v42 = vpack.c.bf16 %v992_v40, %v984_v39  ;;  %v977_v39 = vld [vmem:[#allocation14 + $0x250] sm:$0xff]  ;;  %v986_v40 = vld [vmem:[#allocation14 + $0x298] sm:$0xff] }
 0x229   :  { %1645 = vmatpush1.bf16.msra.mxu0 %v1644_v46  ;;  %v973_v46 = vld [vmem:[#allocation14 + $0x230] sm:$0xff] }
 0x22a   :  { %1647 = vmatprep.subr.bf16.mxu0 %v1646_v47  ;;  %v1802_v47 = vpack.c.bf16 %v982_v45, %v974_v44  ;;  %v1804_v49 = vpack.c.bf16 %v981_v48, %v973_v46  ;;  %v991_v44 = vld [vmem:[#allocation14 + $0x2c0] sm:$0xff]  ;;  %v1000_v45 = vld [vmem:[#allocation14 + $0x308] sm:$0xff] }
 0x22b   :  { %v1008_v46 = vld [vmem:[#allocation14 + $0x348] sm:$0xff] }
 0x22c   :  { %v1714_v48 = vpack.c.bf16 %v1008_v46, %v1000_v45  ;;  %v993_v45 = vld [vmem:[#allocation14 + $0x2d0] sm:$0xff]  ;;  %v1002_v46 = vld [vmem:[#allocation14 + $0x318] sm:$0xff] }
 0x22d   :  { %1649 = vmatpush1.bf16.msra.mxu0 %v1648_v52  ;;  %v989_v52 = vld [vmem:[#allocation14 + $0x2b0] sm:$0xff] }
 0x22e   :  { %1651 = vmatprep.subr.bf16.mxu0 %v1650_v54  ;;  %v1806_v54 = vpack.c.bf16 %v998_v51, %v990_v50  ;;  %v1808_v56 = vpack.c.bf16 %v997_v55, %v989_v52  ;;  %v1007_v50 = vld [vmem:[#allocation14 + $0x340] sm:$0xff]  ;;  %v1016_v52 = vld [vmem:[#allocation14 + $0x388] sm:$0xff] }
 0x231   :  { %1653 = vmatpush1.bf16.msra.mxu0 %v1652_v59  ;;  %v1005_v59 = vld [vmem:[#allocation14 + $0x330] sm:$0xff] }
 0x232   :  { %1655 = vmatprep.subr.bf16.mxu0 %v1654_v61  ;;  %v1013_v61 = vld [vmem:[#allocation14 + $0x370] sm:$0xff] }
 0x233   :  { %v1812_v62 = vpack.c.bf16 %v1013_v61, %v1005_v59  ;;  %v1021_v61 = vld [vmem:[#allocation14 + $0x3b0] sm:$0xff] }
 0x235   :  { %1657 = vmatpush1.bf16.msra.mxu0 %v1656_v0  ;;  %v643_v0 = vrot.slane %v638_v63, %v2283_v9  ;;  %v1029_v63 = vld [vmem:[#allocation14 + $0x3f0] sm:$0xff] }
 0x236   :  { %1787 = vmatprep.subr.bf16.mxu0 %v1786_v22  ;;  %v944_v22 = vld [vmem:[#allocation14 + $0x148] sm:$0xff] }
 0x237   :  { %v1698_v24 = vpack.c.bf16 %v944_v22, %v936_v21  ;;  %v929_v21 = vld [vmem:[#allocation14 + $0xd0] sm:$0xff]  ;;  %v938_v22 = vld [vmem:[#allocation14 + $0x118] sm:$0xff] }
 0x238   :  { %786 = vmatmul.mubr.f32.vlgmr.msra.gmra.mrb[2].mxu0 %v508_v2 }
 0x239   :  { %1350 = vmatprep.mubr.f32.mxu0 %v2069_v13  ;;  %1789 = vmatpush1.bf16.msra.mxu0 %v1788_v25  ;;  %v935_v25 = vld [vmem:[#allocation14 + $0x100] sm:$0xff] }
 0x23a   :  { %1791 = vmatprep.subr.bf16.mxu0 %v1790_v29  ;;  %v1700_v29 = vpack.c.bf16 %v943_v26, %v935_v25  ;;  %v937_v26 = vld [vmem:[#allocation14 + $0x110] sm:$0xff] }
 0x23d   :  { %1793 = vmatpush1.bf16.msra.mxu0 %v1792_v31  ;;  %v951_v31 = vld [vmem:[#allocation14 + $0x180] sm:$0xff] }
 0x23e   :  { %1795 = vmatprep.subr.bf16.mxu0 %v1794_v35  ;;  %v1704_v35 = vpack.c.bf16 %v959_v32, %v951_v31  ;;  %v953_v32 = vld [vmem:[#allocation14 + $0x190] sm:$0xff] }
 0x241   :  { %1797 = vmatpush1.bf16.msra.mxu0 %v1796_v37  ;;  %v967_v37 = vld [vmem:[#allocation14 + $0x200] sm:$0xff] }
 0x242   :  { %1799 = vmatprep.subr.bf16.mxu0 %v1798_v41  ;;  %v1708_v41 = vpack.c.bf16 %v975_v38, %v967_v37  ;;  %v969_v38 = vld [vmem:[#allocation14 + $0x210] sm:$0xff] }
 0x245   :  { %1801 = vmatpush1.bf16.msra.mxu0 %v1800_v43  ;;  %v983_v43 = vld [vmem:[#allocation14 + $0x280] sm:$0xff] }
 0x246   :  { %1803 = vmatprep.subr.bf16.mxu0 %v1802_v47  ;;  %v1712_v47 = vpack.c.bf16 %v991_v44, %v983_v43  ;;  %v985_v44 = vld [vmem:[#allocation14 + $0x290] sm:$0xff] }
 0x249   :  { %1805 = vmatpush1.bf16.msra.mxu0 %v1804_v49  ;;  %v999_v49 = vld [vmem:[#allocation14 + $0x300] sm:$0xff] }
 0x24a   :  { %1807 = vmatprep.subr.bf16.mxu0 %v1806_v54  ;;  %v1716_v51 = vpack.c.bf16 %v1007_v50, %v999_v49  ;;  %v1024_v54 = vld [vmem:[#allocation14 + $0x3c8] sm:$0xff]  ;;  %v1001_v50 = vld [vmem:[#allocation14 + $0x310] sm:$0xff] }
 0x24b   :  { %v1718_v55 = vpack.c.bf16 %v1024_v54, %v1016_v52  ;;  %v1018_v52 = vld [vmem:[#allocation14 + $0x398] sm:$0xff] }
 0x24c   :  { %v1026_v54 = vld [vmem:[#allocation14 + $0x3d8] sm:$0xff] }
 0x24d   :  { %1809 = vmatpush1.bf16.msra.mxu0 %v1808_v56  ;;  %v1015_v56 = vld [vmem:[#allocation14 + $0x380] sm:$0xff] }
 0x24e   :  { %1811 = vmatprep.subr.bf16.mxu0 %v1810_v60  ;;  %v1720_v59 = vpack.c.bf16 %v1023_v57, %v1015_v56  ;;  %v1030_v60 = vld [vmem:[#allocation14 + $0x3f8] sm:$0xff]  ;;  %v1750_v56 = vpack.c.bf16 %v1026_v54, %v1018_v52  ;;  %v1017_v57 = vld [vmem:[#allocation14 + $0x390] sm:$0xff] }
 0x251   :  { %1813 = vmatpush1.bf16.msra.mxu0 %v1812_v62  ;;  %v1814_v62 = vpack.c.bf16 %v1030_v60, %v1022_v58  ;;  %v1025_v58 = vld [vmem:[#allocation14 + $0x3d0] sm:$0xff]  ;;  %v916_v60 = vld [vmem:[#allocation14 + $0x68] sm:$0xff] }
 0x253   :  { %1815 = vmatprep.subr.bf16.mxu0 %v1814_v62 }
 0x30b   :  { %v787_v2 = vpop.f32.mrb[2].mxu0 }
 0x30c   :  { %v1818_v3 = vadd.f32 %v787_v2, %v643_v0  ;;  %v789_v4 = vpop.f32.mrb[3].mxu0  ;;  %v1816_v0 = vpack.c.bf16 %v1029_v63, %v1021_v61  ;;  %v914_v2 = vld [vmem:[#allocation14 + $0x58] sm:$0xff]  ;;  %v1752_v61 = vpack.c.bf16 %v1025_v58, %v1017_v57  ;;  %v907_v63 = vld [vmem:[#allocation14 + $0x20] sm:$0xff] }
 0x30d   :  { %v1819_v10 = vadd.f32 %v789_v4, %v647_v1  ;;  %v906_v1 = vld [vmem:[#allocation14 + $0x18] sm:$0xff] }
 0x30e   :  { %v792_v17 = vmax.f32 %v1818_v3, 0.0  ;;  %v1722_v3 = vpack.c.bf16 %v914_v2, %v906_v1  ;;  %1817 = vmatpush1.bf16.msra.mxu0 %v1816_v0  ;;  %v915_v0 = vld [vmem:[#allocation14 + $0x60] sm:$0xff]  ;;  %v924_v1 = vld [vmem:[#allocation14 + $0xa8] sm:$0xff] }
 0x30f   :  { %v793_v15 = vmax.f32 %v1819_v10, 0.0  ;;  %v1430_v10 = vld [vmem:[%s2361_s9] ss:$0 sm:$0xff]  ;;  %v932_v2 = vld [vmem:[#allocation14 + $0xe8] sm:$0xff] }
 0x311   :  { %897 = vmatprep.mubr.f32.mxu1 %v793_v15  ;;  %v930_v15 = vld [vmem:[#allocation14 + $0xd8] sm:$0xff] }
 0x312   :  { %898 = vmatmul.mubr.f32.vlgmr.msra.gmra.mrb[2].mxu1 %v792_v17  ;;  %v1724_v17 = vpack.c.bf16 %v913_v6, %v905_v5  ;;  %v1726_v19 = vpack.c.bf16 %v930_v15, %v922_v14  ;;  %v923_v5 = vld [vmem:[#allocation14 + $0xa0] sm:$0xff] }
 0x313   :  { %1693 = vmatpush1.bf16.msra.mxu1 %v1692_v16  ;;  %1137 = vmatprep.mubr.f32.mxu1 %v2069_v13  ;;  %v931_v6 = vld [vmem:[#allocation14 + $0xe0] sm:$0xff] }
 0x314   :  { %1695 = vmatprep.subr.bf16.mxu1 %v1694_v18  ;;  %v1760_v14 = vpack.c.bf16 %v931_v6, %v923_v5  ;;  %v2070_v6 = vmov 1983009808  }
 0x317   :  { %1697 = vmatpush1.bf16.msra.mxu1 %v1696_v23  ;;  %v946_v23 = vld [vmem:[#allocation14 + $0x158] sm:$0xff] }
 0x318   :  { %1699 = vmatprep.subr.bf16.mxu1 %v1698_v24  ;;  %v1728_v24 = vpack.c.bf16 %v929_v21, %v921_v20  ;;  %v1730_v25 = vpack.c.bf16 %v946_v23, %v938_v22  ;;  %v964_v20 = vld [vmem:[#allocation14 + $0x1e8] sm:$0xff]  ;;  %v955_v23 = vld [vmem:[#allocation14 + $0x1a0] sm:$0xff] }
 0x31b   :  { %1701 = vmatpush1.bf16.msra.mxu1 %v1700_v29  ;;  %v962_v29 = vld [vmem:[#allocation14 + $0x1d8] sm:$0xff] }
 0x31c   :  { %1703 = vmatprep.subr.bf16.mxu1 %v1702_v30  ;;  %v1732_v30 = vpack.c.bf16 %v945_v27, %v937_v26  ;;  %v1734_v31 = vpack.c.bf16 %v962_v29, %v954_v28  ;;  %v980_v26 = vld [vmem:[#allocation14 + $0x268] sm:$0xff]  ;;  %v971_v29 = vld [vmem:[#allocation14 + $0x220] sm:$0xff] }
 0x31f   :  { %1705 = vmatpush1.bf16.msra.mxu1 %v1704_v35  ;;  %v978_v35 = vld [vmem:[#allocation14 + $0x258] sm:$0xff] }
 0x320   :  { %1707 = vmatprep.subr.bf16.mxu1 %v1706_v36  ;;  %v1736_v36 = vpack.c.bf16 %v961_v33, %v953_v32  ;;  %v1738_v37 = vpack.c.bf16 %v978_v35, %v970_v34  ;;  %v987_v34 = vld [vmem:[#allocation14 + $0x2a0] sm:$0xff] }
 0x321   :  { %v995_v35 = vld [vmem:[#allocation14 + $0x2e0] sm:$0xff] }
 0x323   :  { %1709 = vmatpush1.bf16.msra.mxu1 %v1708_v41  ;;  %v994_v41 = vld [vmem:[#allocation14 + $0x2d8] sm:$0xff] }
 0x324   :  { %1711 = vmatprep.subr.bf16.mxu1 %v1710_v42  ;;  %v1740_v42 = vpack.c.bf16 %v977_v39, %v969_v38  ;;  %v1742_v43 = vpack.c.bf16 %v994_v41, %v986_v40  ;;  %v1776_v38 = vpack.c.bf16 %v995_v35, %v987_v34  ;;  %v1003_v40 = vld [vmem:[#allocation14 + $0x320] sm:$0xff] }
 0x325   :  { %v1011_v41 = vld [vmem:[#allocation14 + $0x360] sm:$0xff] }
 0x327   :  { %1713 = vmatpush1.bf16.msra.mxu1 %v1712_v47  ;;  %v1010_v47 = vld [vmem:[#allocation14 + $0x358] sm:$0xff] }
 0x328   :  { %1715 = vmatprep.subr.bf16.mxu1 %v1714_v48  ;;  %v1744_v48 = vpack.c.bf16 %v993_v45, %v985_v44  ;;  %v1746_v49 = vpack.c.bf16 %v1010_v47, %v1002_v46  ;;  %v1780_v44 = vpack.c.bf16 %v1011_v41, %v1003_v40  ;;  %v1019_v46 = vld [vmem:[#allocation14 + $0x3a0] sm:$0xff] }
 0x329   :  { %v1027_v47 = vld [vmem:[#allocation14 + $0x3e0] sm:$0xff] }
 0x32b   :  { %1717 = vmatpush1.bf16.msra.mxu1 %v1716_v51  ;;  %v1009_v51 = vld [vmem:[#allocation14 + $0x350] sm:$0xff] }
 0x32c   :  { %1719 = vmatprep.subr.bf16.mxu1 %v1718_v55  ;;  %v1748_v55 = vpack.c.bf16 %v1009_v51, %v1001_v50  ;;  %v1031_v50 = vld [vmem:[%s2363_s11] sm:$0xff]  ;;  %v1063_v51 = vsub.s32 7, %v2280_v8  ;;  %s2071_s11 = smov [#allocation16]  }
 0x32d   :  { %v1036_v52 = vrot.slane %v1031_v50, %v2283_v9  ;;  %v1376_v9 = vunpack.c.l.s4 %v2070_v6  ;;  %s1417_s28 = sshll.u32 %s2071_s11, 4  ;;  %s1418_s28 = int_to_ptr.vmem [resolvable:$true] %s1417_s28 }
 0x32e   :  { %s2018_s13 = scalar_lea.vmem %s1418_s28, 256  ;;  %p2023_p9 = scmp.lt.s32.totalorder %s1418_s28, %s1418_s28 }
 0x32f   :  { %1721 = vmatpush1.bf16.msra.mxu1 %v1720_v59  ;;  %v908_v59 = vld [vmem:[#allocation14 + $0x28] sm:$0xff]  ;;  %p2019_p8 = scmp.ne.s32.totalorder %s1418_s28, %s2018_s13  ;;  %p2024_p10 = scmp.lt.s32.totalorder %s2018_s13, %s2018_s13 }
 0x330   :  { %1723 = vmatprep.subr.bf16.mxu1 %v1722_v3  ;;  %v1754_v62 = vpack.c.bf16 %v916_v60, %v908_v59  ;;  %v1756_v3 = vpack.c.bf16 %v915_v0, %v907_v63 }
 0x331   :  { %p2025_p11 = por %p2024_p10, %p2023_p9 }
 0x333   :  { %p2026_p12 = pnand %p2025_p11, %p2019_p8 }
 0x3e5   :  { %v1463_v4 = vpop.f32.mrb[2].mxu1 }
 0x3e6   :  { %v1464_v7 = vpop.f32.mrb[3].mxu1 }
 0x3e7   :  { %v1465_v16 = vadd.f32 %v1464_v7, %v1463_v4  ;;  %v1758_v4 = vpack.c.bf16 %v932_v2, %v924_v1  ;;  %v948_v7 = vld [vmem:[#allocation14 + $0x168] sm:$0xff] }
 0x3e9   :  { %v2318_v18 = vadd.f32 %v1465_v16, %v1430_v10  ;;  %v940_v10 = vld [vmem:[#allocation14 + $0x128] sm:$0xff]  ;;  %v939_v16 = vld [vmem:[#allocation14 + $0x120] sm:$0xff] }
 0x3ea   :  { %v1762_v15 = vpack.c.bf16 %v948_v7, %v940_v10  ;;  %v1048_v10 = vrot.slane %v1031_v50, %v358_v12  ;;  %v1377_v7 = vunpack.c.0.s8 %v1376_v9 }
 0x3eb   :  { %1138 = vmatmul.mubr.f32.vlgmr.msra.gmra.mrb[4].mxu1 %v2318_v18  ;;  %1351 = vmatmul.mubr.f32.vlgmr.msra.gmra.mrb[4].mxu0 %v2318_v18 }
 0x3ec   :  { %1725 = vmatpush1.bf16.msra.mxu1 %v1724_v17  ;;  %1208 = vmatprep.mubr.f32.mxu1 %v2069_v13  ;;  %v947_v17 = vld [vmem:[#allocation14 + $0x160] sm:$0xff] }
 0x3ed   :  { %1727 = vmatprep.subr.bf16.mxu1 %v1726_v19  ;;  %v956_v19 = vld [vmem:[#allocation14 + $0x1a8] sm:$0xff]  ;;  %v1764_v21 = vpack.c.bf16 %v947_v17, %v939_v16 }
 0x3ee   :  { %v1766_v22 = vpack.c.bf16 %v964_v20, %v956_v19  ;;  %v1380_v20 = vsub.s32 %v1377_v7, %v2280_v8 }
 0x3f0   :  { %1729 = vmatpush1.bf16.msra.mxu1 %v1728_v24  ;;  %v963_v24 = vld [vmem:[#allocation14 + $0x1e0] sm:$0xff] }
 0x3f1   :  { %1731 = vmatprep.subr.bf16.mxu1 %v1730_v25  ;;  %v972_v25 = vld [vmem:[#allocation14 + $0x228] sm:$0xff]  ;;  %v1768_v27 = vpack.c.bf16 %v963_v24, %v955_v23 }
 0x3f2   :  { %v1770_v28 = vpack.c.bf16 %v980_v26, %v972_v25  ;;  %v1051_v26 = vsub.s32 4, %v2280_v8 }
 0x3f4   :  { %1733 = vmatpush1.bf16.msra.mxu1 %v1732_v30  ;;  %v988_v30 = vld [vmem:[#allocation14 + $0x2a8] sm:$0xff] }
 0x3f5   :  { %1735 = vmatprep.subr.bf16.mxu1 %v1734_v31  ;;  %v996_v31 = vld [vmem:[#allocation14 + $0x2e8] sm:$0xff] }
 0x3f6   :  { %v1774_v33 = vpack.c.bf16 %v996_v31, %v988_v30 }
 0x3f8   :  { %1737 = vmatpush1.bf16.msra.mxu1 %v1736_v36  ;;  %v1004_v36 = vld [vmem:[#allocation14 + $0x328] sm:$0xff] }
 0x3f9   :  { %1739 = vmatprep.subr.bf16.mxu1 %v1738_v37  ;;  %v1012_v37 = vld [vmem:[#allocation14 + $0x368] sm:$0xff] }
 0x3fa   :  { %v1778_v39 = vpack.c.bf16 %v1012_v37, %v1004_v36 }
 0x3fc   :  { %1741 = vmatpush1.bf16.msra.mxu1 %v1740_v42  ;;  %v1020_v42 = vld [vmem:[#allocation14 + $0x3a8] sm:$0xff] }
 0x3fd   :  { %1743 = vmatprep.subr.bf16.mxu1 %v1742_v43  ;;  %v1028_v43 = vld [vmem:[#allocation14 + $0x3e8] sm:$0xff] }
 0x3fe   :  { %v1782_v45 = vpack.c.bf16 %v1028_v43, %v1020_v42 }
 0x400   :  { %1745 = vmatpush1.bf16.msra.mxu1 %v1744_v48  ;;  %v1784_v48 = vpack.c.bf16 %v1027_v47, %v1019_v46 }
 0x401   :  { %1747 = vmatprep.subr.bf16.mxu1 %v1746_v49  ;;  %v1059_v49 = vsub.s32 6, %v2280_v8 }
 0x403   :  { %v1060_v54 = vrot.slane %v1031_v50, %v1059_v49 }
 0x404   :  { %1749 = vmatpush1.bf16.msra.mxu1 %v1748_v55  ;;  %v1040_v55 = vrot.slane %v1031_v50, %v2291_v11  ;;  %v1044_v11 = vrot.slane %v1031_v50, %v354_v53  ;;  %v1055_v53 = vsub.s32 5, %v2280_v8 }
 0x405   :  { %1751 = vmatprep.subr.bf16.mxu1 %v1750_v56  ;;  %v1064_v56 = vrot.slane %v1031_v50, %v1063_v51 }
 0x406   :  { %v1056_v12 = vrot.slane %v1031_v50, %v1055_v53 }
 0x408   :  { %1753 = vmatpush1.bf16.msra.mxu1 %v1752_v61 }
 0x409   :  { %1755 = vmatprep.subr.bf16.mxu1 %v1754_v62 }
 0x40b   :  { %1209 = vmatmul.mubr.f32.vlgmr.msra.gmra.mrb[6].mxu1 %v2318_v18 }
 0x40c   :  { %1757 = vmatpush1.bf16.msra.mxu1 %v1756_v3  ;;  %1279 = vmatprep.mubr.f32.mxu1 %v2069_v13  ;;  %v979_v13 = vld [vmem:[#allocation14 + $0x260] sm:$0xff] }
 0x40d   :  { %1759 = vmatprep.subr.bf16.mxu1 %v1758_v4  ;;  %v1772_v32 = vpack.c.bf16 %v979_v13, %v971_v29 }
 0x410   :  { %1761 = vmatpush1.bf16.msra.mxu1 %v1760_v14 }
 0x411   :  { %1763 = vmatprep.subr.bf16.mxu1 %v1762_v15 }
 0x414   :  { %1765 = vmatpush1.bf16.msra.mxu1 %v1764_v21 }
 0x415   :  { %1767 = vmatprep.subr.bf16.mxu1 %v1766_v22 }
 0x418   :  { %1769 = vmatpush1.bf16.msra.mxu1 %v1768_v27  ;;  %v1052_v27 = vrot.slane %v1031_v50, %v1051_v26 }
 0x419   :  { %1771 = vmatprep.subr.bf16.mxu1 %v1770_v28 }
 0x41c   :  { %1773 = vmatpush1.bf16.msra.mxu1 %v1772_v32 }
 0x41d   :  { %1775 = vmatprep.subr.bf16.mxu1 %v1774_v33 }
 0x420   :  { %1777 = vmatpush1.bf16.msra.mxu1 %v1776_v38 }
 0x421   :  { %1779 = vmatprep.subr.bf16.mxu1 %v1778_v39 }
 0x424   :  { %1781 = vmatpush1.bf16.msra.mxu1 %v1780_v44 }
 0x425   :  { %1783 = vmatprep.subr.bf16.mxu1 %v1782_v45 }
 0x428   :  { %1785 = vmatpush1.bf16.msra.mxu1 %v1784_v48 }
 0x42b   :  { %1280 = vmatmul.mubr.f32.vlgmr.msra.gmra.mrb[8].mxu1 %v2318_v18 }
 0x4be   :  { %v1139_v57 = vpop.f32.mrb[4].mxu1  ;;  %v1352_v58 = vpop.f32.mrb[4].mxu0 }
 0x4bf   :  { %v1140_v59 = vadd.f32 %v1139_v57, %v1036_v52  ;;  %v1353_v60 = vadd.f32 %v1352_v58, %v1060_v54  ;;  %v1141_v61 = vpop.f32.mrb[5].mxu1  ;;  %v1354_v18 = vpop.f32.mrb[5].mxu0 }
 0x4c0   :  { %v1142_v62 = vadd.f32 %v1141_v61, %v1040_v55  ;;  %v1355_v63 = vadd.f32 %v1354_v18, %v1064_v56 }
 0x4c1   :  { %v1357_v0 = vmax.f32 %v1140_v59, 0.0  ;;  %v1363_v1 = vmax.f32 %v1353_v60, 0.0 }
 0x4c2   :  { %v1358_v2 = vmax.f32 %v1142_v62, 0.0  ;;  %v1364_v3 = vmax.f32 %v1355_v63, 0.0 }
 0x4c4   :  { %v1373_v4 = vcombine.low %v1357_v0, %v1358_v2  ;;  %v1391_v5 = vcombine.low %v1363_v1, %v1364_v3 }
 0x4c6   :  { %v1381_v23 = vrot.slane %v1373_v4, %v1380_v20  ;;  %v1405_v34 = vrot.slane %v1391_v5, %v1380_v20 }
 0x4de   :  { %v1210_v14 = vpop.f32.mrb[6].mxu1 }
 0x4df   :  { %v1211_v15 = vadd.f32 %v1210_v14, %v1044_v11  ;;  %v1212_v16 = vpop.f32.mrb[7].mxu1 }
 0x4e0   :  { %v1213_v17 = vadd.f32 %v1212_v16, %v1048_v10 }
 0x4e1   :  { %v1359_v19 = vmax.f32 %v1211_v15, 0.0 }
 0x4e2   :  { %v1360_v21 = vmax.f32 %v1213_v17, 0.0 }
 0x4e4   :  { %v1374_v22 = vcombine.low %v1359_v19, %v1360_v21 }
 0x4e6   :  { %v1388_v24 = vrot.slane %v1374_v22, %v1380_v20 }
 0x4e8   :  { %v1389_v25 = vcombine.low %v1381_v23, %v1388_v24 }
 0x4ea   :  { %1409 = vst [vmem:[#allocation16] sm:$0xff] %v1389_v25 }
 0x4fe   :  { %v1281_v28 = vpop.f32.mrb[8].mxu1 }
 0x4ff   :  { %v1282_v29 = vadd.f32 %v1281_v28, %v1052_v27  ;;  %v1283_v13 = vpop.f32.mrb[9].mxu1 }
 0x500   :  { %v1284_v30 = vadd.f32 %v1283_v13, %v1056_v12 }
 0x501   :  { %v1361_v31 = vmax.f32 %v1282_v29, 0.0 }
 0x502   :  { %v1362_v32 = vmax.f32 %v1284_v30, 0.0 }
 0x504   :  { %v1390_v33 = vcombine.low %v1361_v31, %v1362_v32 }
 0x506   :  { %v1398_v35 = vrot.slane %v1390_v33, %v1380_v20 }
 0x508   :  { %v1406_v36 = vcombine.low %v1398_v35, %v1405_v34 }
 0x50a   :  { %1410 = vst [vmem:[#allocation16 + $0x8] sm:$0xff] %v1406_v36 }
 0x50b   :  { %2029 = shalt.err (!%p2026_p12)
}
 0x50c   :  { %s2030_s19 = scalar_lea.hbm %s2364_s12, 256 }
 0x50d   :  { %p2031_p13 = scmp.ne.s32.totalorder %s2364_s12, %s2030_s19  ;;  %p2034_p0 = scmp.lt.u32.totalorder %s2030_s19, %s2364_s12 }
 0x50f   :  { %p2036_p1 = pnand %p2034_p0, %p2031_p13 }
 0x511   :  { %2039 = shalt.err (!%p2036_p1)
}
 0x512   :  { %1420 = dma.vmem_to_hbm [thread:$0]  %s1418_s28, 256, %s2364_s12, [#allocation4]  }
 0x513   :  { %2050 = dma.done.wait [#allocation4], 256  }
 0x514   :  { %2051 = vsyncadd [#allocation4], 4294967040 }
 0x515   :  { %1424 = vsyncpa [#allocation3], 1 }
 0x516   :  { %1425 = vsyncpa [#allocation6], 1 }
 0x517   :  { %1426 = vsyncpa [#allocation9], 1 }
 0x518   :  { %1427 = vsyncpa [#allocation12], 1 }
 0x519   :  { %1428 = vsyncpa [#allocation15], 1 }
 0x51a   :  { %1429 = vsyncpa [#allocation4], 1 }

</bundles_post_ra>
